<compile_context>
chip_gen: v5e
topology: v5e:2x2
jax: 0.10.0
libtpu: 0.0.40
codegen_flags: <defaults>
</compile_context>

<pallas_src>
import functools

import jax
import jax.numpy as jnp
from jax import lax
from jax.experimental import pallas as pl
from jax.experimental.pallas import tpu as pltpu

EPS = 1e-5


def _bn_conv_bn_kernel(x_ref, w_ref, g1_ref, p_ref, o_ref, *, hw):
    """x_ref: [C, HW] f32.  w_ref: [Cout, Cin] 1x1-conv weight.
    g1_ref: [1, Cin] = gamma1.  p_ref: [Cout, 2] = (gamma2, beta2) columns."""
    f32 = jnp.float32
    inv_hw = f32(1.0 / hw)
    dn_nn = (((1,), (0,)), ((), ()))   # standard        A[M,K] @ B[K,N]
    dn_nt = (((1,), (1,)), ((), ()))   # rhs-transposed  A[M,K] @ B[N,K]^T

    x = x_ref[...]                     # [C, HW]
    w = w_ref[...]                     # [Cout, Cin]
    c = x.shape[0]

    # ---- BN1 batch statistics from one MXU pass over x (+ a ones matvec).
    gram = lax.dot_general(x, x, dn_nt, preferred_element_type=f32)          # [C, C]
    ones_row = jnp.ones((1, x.shape[1]), f32)
    sum_row = lax.dot_general(ones_row, x, dn_nt, preferred_element_type=f32)  # [1, C]
    mean1_row = sum_row * inv_hw                                             # [1, Cin]

    rows = lax.broadcasted_iota(jnp.int32, (c, c), 0)
    cols = lax.broadcasted_iota(jnp.int32, (c, c), 1)
    diag_row = jnp.sum(jnp.where(rows == cols, gram, 0.0),
                       axis=0, keepdims=True)                                # [1, Cin]
    # NOTE: single-pass variance (E[x^2]-mean^2); fine for activation-scale
    # data, clamped at 0 against rounding.
    var1_row = jnp.maximum(diag_row * inv_hw - mean1_row * mean1_row, 0.0)
    s1_row = g1_ref[...] * lax.rsqrt(var1_row + EPS)                         # [1, Cin]

    # ---- Fold BN1 into the conv weight (layout-natural column scaling).
    a = w * s1_row                                                           # A[o,i]

    # ---- BN2 statistics analytically from the Gram (z never materialized).
    mean2_col = jnp.sum(a * mean1_row, axis=1, keepdims=True)                # [Cout,1] = A mean1
    ag = lax.dot_general(a, gram, dn_nn, preferred_element_type=f32)         # [Cout, Cin]
    acov = ag * inv_hw - mean2_col * mean1_row                               # A @ Cov_x
    var2_col = jnp.maximum(jnp.sum(acov * a, axis=1, keepdims=True), 0.0)    # diag(A Cov A^T)
    s2_col = p_ref[:, 0:1] * lax.rsqrt(var2_col + EPS)                       # [Cout, 1]

    # ---- Fold BN2 into weight/bias: single full-width output matmul + add.
    b = s2_col * a                                                           # [Cout, Cin]
    bias_col = p_ref[:, 1:2] - s2_col * mean2_col                            # [Cout, 1]
    out = lax.dot_general(b, x, dn_nn, preferred_element_type=f32) + bias_col
    o_ref[...] = out.astype(o_ref.dtype)


@jax.jit
def bn_conv_bn(x_nchw, gamma1, beta1, w, gamma2, beta2):
    # beta1 (and BN1's mean shift) only contribute a per-output-channel
    # constant after the 1x1 conv, which BN2 cancels exactly -> never needed.
    del beta1
    n, c, h, wd = x_nchw.shape
    hw = n * h * wd

    # NCHW -> [C, N*H*W].  Free reshape for N == 1.
    # TODO(synk): for N > 1 fuse this relayout into the kernel (grid over N,
    # DMA each (C, H*W) slab to its lane offset) instead of an XLA transpose.
    if n == 1:
        x2d = x_nchw.reshape(c, hw)
    else:
        x2d = jnp.transpose(x_nchw, (1, 0, 2, 3)).reshape(c, hw)
    x2d = x2d.astype(jnp.float32)

    w2d = w.reshape(c, c).astype(jnp.float32)                  # [Cout, Cin], natural
    g1_row = gamma1.reshape(1, c).astype(jnp.float32)          # lane-oriented (free)
    p_col = jnp.stack([gamma2.astype(jnp.float32),
                       beta2.astype(jnp.float32)], axis=1)     # [C, 2], one small DMA

    # Whole-array working set: x + out + a handful of [C,C] temporaries.
    # TODO(synk): for large N*H*W (v7x: 64 MiB VMEM, v5e: 16 MiB scoped default)
    # switch to an HW-tiled grid (stats axis 'arbitrary', output axis 'parallel').
    working = 4 * (2 * c * hw + 6 * c * c)
    vmem_limit = int(min(max(2 * working, 32 << 20), 48 << 20))

    flops = 4 * c * c * hw + 2 * c * hw + 2 * c * c * c
    bytes_accessed = 4 * (2 * c * hw + c * c + 3 * c)

    vmem = pl.BlockSpec(memory_space=pltpu.MemorySpace.VMEM)   # whole array, no grid
    out2d = pl.pallas_call(
        functools.partial(_bn_conv_bn_kernel, hw=hw),
        out_shape=jax.ShapeDtypeStruct((c, hw), x_nchw.dtype),
        in_specs=[vmem, vmem, vmem, vmem],
        out_specs=vmem,
        cost_estimate=pl.CostEstimate(flops=flops, transcendentals=2 * c,
                                      bytes_accessed=bytes_accessed),
        compiler_params=pltpu.CompilerParams(vmem_limit_bytes=vmem_limit),
    )(x2d, w2d, g1_row, p_col)

    if n == 1:
        return out2d.reshape(1, c, h, wd)
    return jnp.transpose(out2d.reshape(c, n, h, wd), (1, 0, 2, 3))


def _reference(x, gamma1, beta1, w, gamma2, beta2):
    # Pure-JAX reference with PyTorch training-mode BN semantics.
    def bn(t, g, b):
        m = jnp.mean(t, axis=(0, 2, 3), keepdims=True)
        v = jnp.mean(jnp.square(t - m), axis=(0, 2, 3), keepdims=True)
        return (t - m) / jnp.sqrt(v + EPS) * g.reshape(1, -1, 1, 1) + b.reshape(1, -1, 1, 1)

    y = bn(x, gamma1, beta1)
    z = jnp.einsum("oc,nchw->nohw", w, y)
    return bn(z, gamma2, beta2)


if __name__ == "__main__":
    C, H, W = 88, 28, 28
    key = jax.random.PRNGKey(0)
    k_x, k_w, k_g1, k_b1, k_g2, k_b2 = jax.random.split(key, 6)

    x = jax.random.normal(k_x, (1, C, H, W), dtype=jnp.float32)

    # Deterministic synthetic parameters (not a checkpoint load).
    conv_w = jax.random.normal(k_w, (C, C), dtype=jnp.float32) * 0.05  # 1x1 conv weight
    gamma1 = 1.0 + 0.1 * jax.random.normal(k_g1, (C,), dtype=jnp.float32)
    beta1 = 0.1 * jax.random.normal(k_b1, (C,), dtype=jnp.float32)
    gamma2 = 1.0 + 0.1 * jax.random.normal(k_g2, (C,), dtype=jnp.float32)
    beta2 = 0.1 * jax.random.normal(k_b2, (C,), dtype=jnp.float32)

    out = bn_conv_bn(x, gamma1, beta1, conv_w, gamma2, beta2)
    out = jax.block_until_ready(out)

    ref = _reference(x, gamma1, beta1, conv_w, gamma2, beta2)
    assert out.shape == (1, C, H, W), out.shape
    err = float(jnp.max(jnp.abs(out - ref)))
    assert jnp.allclose(out, ref, atol=5e-4, rtol=5e-4), err

    print("KERNEL_OK")
</pallas_src>

<mosaic_0001>
module attributes {stable_mosaic.version = 11 : i64} {
  func.func @_bn_conv_bn_kernel(%arg0: memref<88x784xf32, #tpu.memory_space<vmem>>, %arg1: memref<88x88xf32, #tpu.memory_space<vmem>>, %arg2: memref<1x88xf32, #tpu.memory_space<vmem>>, %arg3: memref<88x2xf32, #tpu.memory_space<vmem>>, %arg4: memref<88x784xf32, #tpu.memory_space<vmem>>) attributes {dimension_semantics = [], scalar_prefetch = 0 : i64, scratch_operands = 0 : i64, tpu.core_type = #tpu.core_type<tc>} {
    %c0 = arith.constant 0 : index
    %c0_0 = arith.constant 0 : index
    %0 = vector.load %arg0[%c0, %c0_0] : memref<88x784xf32, #tpu.memory_space<vmem>>, vector<88x784xf32>
    %c0_1 = arith.constant 0 : index
    %c0_2 = arith.constant 0 : index
    %1 = vector.load %arg1[%c0_1, %c0_2] : memref<88x88xf32, #tpu.memory_space<vmem>>, vector<88x88xf32>
    %cst = arith.constant dense<0.000000e+00> : vector<88x88xf32>
    %2 = tpu.matmul %0, %0, %cst {dimension_numbers = #tpu.dot_dimension_numbers<[1], [1], [0], [0], [0, 0, 1, 0], [], []>} : vector<88x784xf32>, vector<88x784xf32>, vector<88x88xf32> -> vector<88x88xf32>
    %cst_3 = arith.constant 1.000000e+00 : f32
    %3 = vector.broadcast %cst_3 : f32 to vector<1x784xf32>
    %cst_4 = arith.constant dense<0.000000e+00> : vector<1x88xf32>
    %4 = tpu.matmul %3, %0, %cst_4 {dimension_numbers = #tpu.dot_dimension_numbers<[1], [1], [0], [0], [0, 0, 1, 0], [], []>} : vector<1x784xf32>, vector<88x784xf32>, vector<1x88xf32> -> vector<1x88xf32>
    %cst_5 = arith.constant 0.00127551018 : f32
    %5 = vector.broadcast %cst_5 : f32 to vector<1x88xf32>
    %6 = arith.mulf %4, %5 : vector<1x88xf32>
    %7 = tpu.iota {dimensions = array<i32: 0>} : vector<88x88xi32>
    %8 = tpu.iota {dimensions = array<i32: 1>} : vector<88x88xi32>
    %9 = arith.cmpi eq, %7, %8 : vector<88x88xi32>
    %cst_6 = arith.constant 0.000000e+00 : f32
    %10 = vector.broadcast %cst_6 : f32 to vector<88x88xf32>
    %11 = arith.select %9, %2, %10 : vector<88x88xi1>, vector<88x88xf32>
    %cst_7 = arith.constant dense<0.000000e+00> : vector<88xf32>
    %12 = vector.multi_reduction <add>, %11, %cst_7 [0] : vector<88x88xf32> to vector<88xf32>
    %13 = vector.shape_cast %12 : vector<88xf32> to vector<1x88xf32>
    %cst_8 = arith.constant 0.00127551018 : f32
    %14 = vector.broadcast %cst_8 : f32 to vector<1x88xf32>
    %15 = arith.mulf %13, %14 : vector<1x88xf32>
    %16 = arith.mulf %6, %6 : vector<1x88xf32>
    %17 = arith.subf %15, %16 : vector<1x88xf32>
    %cst_9 = arith.constant 0.000000e+00 : f32
    %18 = vector.broadcast %cst_9 : f32 to vector<1x88xf32>
    %19 = arith.maximumf %17, %18 : vector<1x88xf32>
    %c0_10 = arith.constant 0 : index
    %c0_11 = arith.constant 0 : index
    %20 = vector.load %arg2[%c0_10, %c0_11] : memref<1x88xf32, #tpu.memory_space<vmem>>, vector<1x88xf32>
    %cst_12 = arith.constant 9.99999974E-6 : f32
    %21 = vector.broadcast %cst_12 : f32 to vector<1x88xf32>
    %22 = arith.addf %19, %21 : vector<1x88xf32>
    %23 = math.rsqrt %22 : vector<1x88xf32>
    %24 = arith.mulf %20, %23 : vector<1x88xf32>
    %25 = vector.broadcast %24 : vector<1x88xf32> to vector<88x88xf32>
    %26 = arith.mulf %1, %25 : vector<88x88xf32>
    %27 = vector.broadcast %6 : vector<1x88xf32> to vector<88x88xf32>
    %28 = arith.mulf %26, %27 : vector<88x88xf32>
    %cst_13 = arith.constant dense<0.000000e+00> : vector<88xf32>
    %29 = vector.multi_reduction <add>, %28, %cst_13 [1] : vector<88x88xf32> to vector<88xf32>
    %30 = vector.shape_cast %29 : vector<88xf32> to vector<88x1xf32>
    %cst_14 = arith.constant dense<0.000000e+00> : vector<88x88xf32>
    %31 = tpu.matmul %26, %2, %cst_14 {dimension_numbers = #tpu.dot_dimension_numbers<[1], [0], [0], [1], [0, 0, 1, 1], [], []>} : vector<88x88xf32>, vector<88x88xf32>, vector<88x88xf32> -> vector<88x88xf32>
    %cst_15 = arith.constant 0.00127551018 : f32
    %32 = vector.broadcast %cst_15 : f32 to vector<88x88xf32>
    %33 = arith.mulf %31, %32 : vector<88x88xf32>
    %34 = vector.broadcast %30 : vector<88x1xf32> to vector<88x88xf32>
    %35 = vector.broadcast %6 : vector<1x88xf32> to vector<88x88xf32>
    %36 = arith.mulf %34, %35 : vector<88x88xf32>
    %37 = arith.subf %33, %36 : vector<88x88xf32>
    %38 = arith.mulf %37, %26 : vector<88x88xf32>
    %cst_16 = arith.constant dense<0.000000e+00> : vector<88xf32>
    %39 = vector.multi_reduction <add>, %38, %cst_16 [1] : vector<88x88xf32> to vector<88xf32>
    %40 = vector.shape_cast %39 : vector<88xf32> to vector<88x1xf32>
    %cst_17 = arith.constant 0.000000e+00 : f32
    %41 = vector.broadcast %cst_17 : f32 to vector<88x1xf32>
    %42 = arith.maximumf %40, %41 : vector<88x1xf32>
    %c0_18 = arith.constant 0 : index
    %c0_19 = arith.constant 0 : index
    %43 = vector.load %arg3[%c0_18, %c0_19] : memref<88x2xf32, #tpu.memory_space<vmem>>, vector<88x1xf32>
    %cst_20 = arith.constant 9.99999974E-6 : f32
    %44 = vector.broadcast %cst_20 : f32 to vector<88x1xf32>
    %45 = arith.addf %42, %44 : vector<88x1xf32>
    %46 = math.rsqrt %45 : vector<88x1xf32>
    %47 = arith.mulf %43, %46 : vector<88x1xf32>
    %48 = vector.broadcast %47 : vector<88x1xf32> to vector<88x88xf32>
    %49 = arith.mulf %48, %26 : vector<88x88xf32>
    %c0_21 = arith.constant 0 : index
    %c1 = arith.constant 1 : index
    %50 = vector.load %arg3[%c0_21, %c1] : memref<88x2xf32, #tpu.memory_space<vmem>>, vector<88x1xf32>
    %51 = arith.mulf %47, %30 : vector<88x1xf32>
    %52 = arith.subf %50, %51 : vector<88x1xf32>
    %cst_22 = arith.constant dense<0.000000e+00> : vector<88x784xf32>
    %53 = tpu.matmul %49, %0, %cst_22 {dimension_numbers = #tpu.dot_dimension_numbers<[1], [0], [0], [1], [0, 0, 1, 1], [], []>} : vector<88x88xf32>, vector<88x784xf32>, vector<88x784xf32> -> vector<88x784xf32>
    %54 = vector.broadcast %52 : vector<88x1xf32> to vector<88x784xf32>
    %55 = arith.addf %53, %54 : vector<88x784xf32>
    %c0_23 = arith.constant 0 : index
    %c0_24 = arith.constant 0 : index
    %56 = vector.load %arg4[%c0_23, %c0_24] : memref<88x784xf32, #tpu.memory_space<vmem>>, vector<88x784xf32>
    tpu.vector_store %arg4[%c0_23, %c0_24], %55 {strides = array<i32>} : memref<88x784xf32, #tpu.memory_space<vmem>>, vector<88x784xf32>,
    return
  }
}

</mosaic_0001>

<bundles_post_ra>
// kernel: bn_conv_bn.1
= control target key start
LH: loop header
LB: loop body
LE: loop exit
PB: predicated region body
PF: predicated region fallthrough
CT: control target
= control target key end

     0   :  { %vm105_vm0 = vcmask 130048   ;;  %vm669_vm3 = vcmask 719872   ;;  %s1951_s8 = smov 1   ;;  %s3855_s0 = inlined_call_operand.vmem [shape: f32[88,784], index: 0, kind: input, shape index: {}]   ;;  %s3856_s2 = inlined_call_operand.vmem [shape: f32[1,88], index: 2, kind: input, shape index: {}]   ;;  %s3857_s1 = inlined_call_operand.vmem [shape: f32[88,88], index: 1, kind: input, shape index: {}]   ;;  %s3858_s3 = inlined_call_operand.vmem [shape: f32[88,2], index: 3, kind: input, shape index: {}]   ;;  %s3859_s4 = inlined_call_operand.vmem [shape: f32[88,784], index: 4, kind: output, shape index: {}]  }
   0x1   :  { %v1981_v0 = vld [vmem:[%s3855_s0 + $0x230] sm:$0xff]  ;;  %v1986_v1 = vld [vmem:[%s3855_s0 + $0x240] sm:$0xff]  ;;  %v1991_v2 = vld [vmem:[%s3855_s0 + $0x238] sm:$0xff] }
   0x2   :  { %144 = vmatpush.xpose.msra.mxu0 %v1981_v0  ;;  %244 = vmatpush.xpose.msra.mxu2 %v1986_v1  ;;  %v1998_v3 = vld [vmem:[%s3855_s0 + $0x248] sm:$0xff]  ;;  %v2005_v4 = vld [vmem:[%s3855_s0 + $0x1f8] sm:$0xff]  ;;  %v2015_v6 = vld [vmem:[%s3855_s0 + $0x200] sm:$0xff] }
   0x3   :  { %194 = vmatpush.xpose.msra.mxu1 %v1991_v2  ;;  %294 = vmatpush.xpose.msra.mxu3 %v1998_v3  ;;  %v2010_v5 = vld [vmem:[%s3855_s0 + $0x208] sm:$0xff]  ;;  %v2020_v7 = vld [vmem:[%s3855_s0 + $0x210] sm:$0xff]  ;;  %v2029_v8 = vld [vmem:[%s3855_s0 + $0x1c0] sm:$0xff] }
   0x4   :  { %v2034_v9 = vld [vmem:[%s3855_s0 + $0x1d0] sm:$0xff]  ;;  %v2039_v10 = vld [vmem:[%s3855_s0 + $0x1c8] sm:$0xff]  ;;  %v2044_v11 = vld [vmem:[%s3855_s0 + $0x1d8] sm:$0xff] }
   0x5   :  { %v2053_v12 = vld [vmem:[%s3855_s0 + $0x188] sm:$0xff]  ;;  %v2058_v13 = vld [vmem:[%s3855_s0 + $0x198] sm:$0xff]  ;;  %v2063_v14 = vld [vmem:[%s3855_s0 + $0x190] sm:$0xff] }
   0x6   :  { %145 = vmatpush.xpose.msra.mxu0 %v2005_v4  ;;  %245 = vmatpush.xpose.msra.mxu2 %v2010_v5  ;;  %v2068_v15 = vld [vmem:[%s3855_s0 + $0x1a0] sm:$0xff]  ;;  %v2077_v16 = vld [vmem:[%s3855_s0 + $0x150] sm:$0xff]  ;;  %v2087_v18 = vld [vmem:[%s3855_s0 + $0x158] sm:$0xff] }
   0x7   :  { %195 = vmatpush.xpose.msra.mxu1 %v2015_v6  ;;  %295 = vmatpush.xpose.msra.mxu3 %v2020_v7  ;;  %v2082_v17 = vld [vmem:[%s3855_s0 + $0x160] sm:$0xff]  ;;  %v2092_v19 = vld [vmem:[%s3855_s0 + $0x168] sm:$0xff]  ;;  %v2101_v20 = vld [vmem:[%s3855_s0 + $0x118] sm:$0xff] }
   0x8   :  { %v2106_v21 = vld [vmem:[%s3855_s0 + $0x128] sm:$0xff]  ;;  %v2111_v22 = vld [vmem:[%s3855_s0 + $0x120] sm:$0xff]  ;;  %v2116_v23 = vld [vmem:[%s3855_s0 + $0x130] sm:$0xff] }
   0x9   :  { %v2125_v24 = vld [vmem:[%s3855_s0 + $0xe0] sm:$0xff]  ;;  %v2130_v25 = vld [vmem:[%s3855_s0 + $0xf0] sm:$0xff]  ;;  %v2135_v26 = vld [vmem:[%s3855_s0 + $0xe8] sm:$0xff] }
   0xa   :  { %146 = vmatpush.xpose.msra.mxu0 %v2029_v8  ;;  %246 = vmatpush.xpose.msra.mxu2 %v2034_v9  ;;  %v2140_v27 = vld [vmem:[%s3855_s0 + $0xf8] sm:$0xff]  ;;  %v2149_v28 = vld [vmem:[%s3855_s0 + $0xa8] sm:$0xff]  ;;  %v2159_v30 = vld [vmem:[%s3855_s0 + $0xb0] sm:$0xff] }
   0xb   :  { %196 = vmatpush.xpose.msra.mxu1 %v2039_v10  ;;  %296 = vmatpush.xpose.msra.mxu3 %v2044_v11  ;;  %3882 = vst [vmem:[#allocation2_spill] sm:$0xff] %v2149_v28  ;;  %v2154_v29 = vld [vmem:[%s3855_s0 + $0xb8] sm:$0xff]  ;;  %v2164_v31 = vld [vmem:[%s3855_s0 + $0xc0] sm:$0xff]  ;;  %v2173_v32 = vld [vmem:[%s3855_s0 + $0x70] sm:$0xff] }
   0xc   :  { %3883 = vst [vmem:[#allocation3_spill] sm:$0xff] %v2173_v32  ;;  %v2178_v33 = vld [vmem:[%s3855_s0 + $0x80] sm:$0xff]  ;;  %v2183_v34 = vld [vmem:[%s3855_s0 + $0x78] sm:$0xff]  ;;  %v2188_v35 = vld [vmem:[%s3855_s0 + $0x88] sm:$0xff] }
   0xd   :  { %v2197_v36 = vld [vmem:[%s3855_s0 + $0x38] sm:$0xff]  ;;  %v2202_v37 = vld [vmem:[%s3855_s0 + $0x48] sm:$0xff]  ;;  %v2207_v38 = vld [vmem:[%s3855_s0 + $0x40] sm:$0xff] }
   0xe   :  { %147 = vmatpush.xpose.msra.mxu0 %v2053_v12  ;;  %247 = vmatpush.xpose.msra.mxu2 %v2058_v13  ;;  %3884 = vst [vmem:[#allocation4_spill] sm:$0xff] %v2197_v36  ;;  %v2212_v39 = vld [vmem:[%s3855_s0 + $0x50] sm:$0xff]  ;;  %v2221_v40 = vld [vmem:[%s3855_s0] sm:$0xff]  ;;  %v2231_v42 = vld [vmem:[%s3855_s0 + $0x8] sm:$0xff] }
   0xf   :  { %197 = vmatpush.xpose.msra.mxu1 %v2063_v14  ;;  %297 = vmatpush.xpose.msra.mxu3 %v2068_v15  ;;  %3885 = vst [vmem:[#allocation5_spill] sm:$0xff] %v2221_v40  ;;  %v2226_v41 = vld [vmem:[%s3855_s0 + $0x10] sm:$0xff]  ;;  %v2236_v43 = vld [vmem:[%s3855_s0 + $0x18] sm:$0xff]  ;;  %v2241_v44 = vld [vmem:[%s3855_s0 + $0x260] sm:$0xff] }
  0x10   :  { %v2246_v45 = vld [vmem:[%s3855_s0 + $0x250] sm:$0xff]  ;;  %v2258_v46 = vld [vmem:[%s3855_s0 + $0x258] sm:$0xff]  ;;  %v2265_v47 = vld [vmem:[%s3855_s0 + $0x228] sm:$0xff] }
  0x11   :  { %v2270_v48 = vld [vmem:[%s3855_s0 + $0x218] sm:$0xff]  ;;  %v2282_v49 = vld [vmem:[%s3855_s0 + $0x220] sm:$0xff]  ;;  %v2287_v50 = vld [vmem:[%s3855_s0 + $0x1f0] sm:$0xff] }
  0x12   :  { %148 = vmatpush.xpose.msra.mxu0 %v2077_v16  ;;  %248 = vmatpush.xpose.msra.mxu2 %v2082_v17  ;;  %v2292_v51 = vld [vmem:[%s3855_s0 + $0x1e0] sm:$0xff]  ;;  %v2302_v52 = vld [vmem:[%s3855_s0 + $0x1e8] sm:$0xff]  ;;  %v2309_v53 = vld [vmem:[%s3855_s0 + $0x1b8] sm:$0xff] }
  0x13   :  { %198 = vmatpush.xpose.msra.mxu1 %v2087_v18  ;;  %298 = vmatpush.xpose.msra.mxu3 %v2092_v19  ;;  %v2314_v54 = vld [vmem:[%s3855_s0 + $0x1a8] sm:$0xff]  ;;  %v2326_v55 = vld [vmem:[%s3855_s0 + $0x1b0] sm:$0xff]  ;;  %v2331_v56 = vld [vmem:[%s3855_s0 + $0x180] sm:$0xff] }
  0x14   :  { %3886 = vst [vmem:[#allocation6_spill] sm:$0xff] %v2326_v55  ;;  %v2336_v57 = vld [vmem:[%s3855_s0 + $0x170] sm:$0xff]  ;;  %v2346_v58 = vld [vmem:[%s3855_s0 + $0x178] sm:$0xff]  ;;  %v2353_v59 = vld [vmem:[%s3855_s0 + $0x148] sm:$0xff] }
  0x15   :  { %3887 = vst [vmem:[#allocation7_spill] sm:$0xff] %v2331_v56  ;;  %v2358_v60 = vld [vmem:[%s3855_s0 + $0x138] sm:$0xff]  ;;  %v2370_v61 = vld [vmem:[%s3855_s0 + $0x140] sm:$0xff]  ;;  %v2375_v62 = vld [vmem:[%s3855_s0 + $0x110] sm:$0xff] }
  0x16   :  { %149 = vmatpush.xpose.msra.mxu0 %v2101_v20  ;;  %249 = vmatpush.xpose.msra.mxu2 %v2106_v21  ;;  %3888 = vst [vmem:[#allocation8_spill] sm:$0xff] %v2346_v58  ;;  %v2380_v63 = vld [vmem:[%s3855_s0 + $0x100] sm:$0xff] }
  0x17   :  { %199 = vmatpush.xpose.msra.mxu1 %v2111_v22  ;;  %299 = vmatpush.xpose.msra.mxu3 %v2116_v23  ;;  %3889 = vst [vmem:[#allocation9_spill] sm:$0xff] %v2353_v59 }
  0x18   :  { %3890 = vst [vmem:[#allocation10_spill] sm:$0xff] %v2370_v61 }
  0x19   :  { %3891 = vst [vmem:[#allocation11_spill] sm:$0xff] %v2375_v62 }
  0x1a   :  { %150 = vmatpush.xpose.msra.mxu0 %v2125_v24  ;;  %250 = vmatpush.xpose.msra.mxu2 %v2130_v25 }
  0x1b   :  { %200 = vmatpush.xpose.msra.mxu1 %v2135_v26  ;;  %300 = vmatpush.xpose.msra.mxu3 %v2140_v27 }
  0x1e   :  { %151 = vmatpush.xpose.msra.mxu0 %v2149_v28  ;;  %251 = vmatpush.xpose.msra.mxu2 %v2154_v29 }
  0x1f   :  { %201 = vmatpush.xpose.msra.mxu1 %v2159_v30  ;;  %301 = vmatpush.xpose.msra.mxu3 %v2164_v31 }
  0x22   :  { %152 = vmatpush.xpose.msra.mxu0 %v2173_v32  ;;  %252 = vmatpush.xpose.msra.mxu2 %v2178_v33 }
  0x23   :  { %202 = vmatpush.xpose.msra.mxu1 %v2183_v34  ;;  %302 = vmatpush.xpose.msra.mxu3 %v2188_v35 }
  0x26   :  { %153 = vmatpush.xpose.msra.mxu0 %v2197_v36  ;;  %253 = vmatpush.xpose.msra.mxu2 %v2202_v37 }
  0x27   :  { %203 = vmatpush.xpose.msra.mxu1 %v2207_v38  ;;  %303 = vmatpush.xpose.msra.mxu3 %v2212_v39 }
  0x2a   :  { %154 = vmatpush.xpose.msra.mxu0 %v2221_v40  ;;  %254 = vmatpush.xpose.msra.mxu2 %v2226_v41 }
  0x2b   :  { %204 = vmatpush.xpose.msra.mxu1 %v2231_v42  ;;  %304 = vmatpush.xpose.msra.mxu3 %v2236_v43 }
  0x2d   :  { %155 = vmatmul.f32.vlgmr.msra.gmra.mxu0 %v2221_v40  ;;  %255 = vmatmul.f32.vlgmr.msra.gmra.mxu2 %v2226_v41 }
  0x2e   :  { %1738 = vmatpush.xpose.msk.msrb.mxu2 %vm105_vm0, %v2241_v44  ;;  %344 = vmatpush.xpose.msrb.mxu0 %v2246_v45 }
  0x2f   :  { %205 = vmatmul.f32.vlgmr.msra.gmra.mxu1 %v2231_v42  ;;  %305 = vmatmul.f32.vlgmr.msra.gmra.mxu3 %v2236_v43 }
  0x30   :  { %394 = vmatpush.xpose.msrb.mxu1 %v2258_v46  ;;  %497 = vmatpush.xpose.msrb.mxu3 %v1981_v0 }
  0x32   :  { %1739 = vmatpush.xpose.msk.msrb.mxu2 %vm105_vm0, %v2265_v47  ;;  %345 = vmatpush.xpose.msrb.mxu0 %v2270_v48 }
  0x34   :  { %395 = vmatpush.xpose.msrb.mxu1 %v2282_v49  ;;  %498 = vmatpush.xpose.msrb.mxu3 %v2005_v4 }
  0x35   :  { %158 = vmatmul.f32.gmra.mxu0 %v2197_v36  ;;  %258 = vmatmul.f32.gmra.mxu2 %v2202_v37 }
  0x36   :  { %1740 = vmatpush.xpose.msk.msrb.mxu2 %vm105_vm0, %v2287_v50  ;;  %346 = vmatpush.xpose.msrb.mxu0 %v2292_v51 }
  0x37   :  { %208 = vmatmul.f32.gmra.mxu1 %v2207_v38  ;;  %308 = vmatmul.f32.gmra.mxu3 %v2212_v39 }
  0x38   :  { %396 = vmatpush.xpose.msrb.mxu1 %v2302_v52  ;;  %499 = vmatpush.xpose.msrb.mxu3 %v2029_v8 }
  0x3a   :  { %1741 = vmatpush.xpose.msk.msrb.mxu2 %vm105_vm0, %v2309_v53  ;;  %347 = vmatpush.xpose.msrb.mxu0 %v2314_v54 }
  0x3c   :  { %397 = vmatpush.xpose.msrb.mxu1 %v2326_v55  ;;  %500 = vmatpush.xpose.msrb.mxu3 %v2053_v12  ;;  %v2480_v55 = vld [vmem:[%s3855_s0 + $0x20] sm:$0xff] }
  0x3d   :  { %161 = vmatmul.f32.gmra.mxu0 %v2173_v32  ;;  %261 = vmatmul.f32.gmra.mxu2 %v2178_v33 }
  0x3e   :  { %1742 = vmatpush.xpose.msk.msrb.mxu2 %vm105_vm0, %v2331_v56  ;;  %348 = vmatpush.xpose.msrb.mxu0 %v2336_v57  ;;  %v2448_v56 = vld [vmem:[%s3855_s0 + $0x68] sm:$0xff] }
  0x3f   :  { %211 = vmatmul.f32.gmra.mxu1 %v2183_v34  ;;  %311 = vmatmul.f32.gmra.mxu3 %v2188_v35 }
  0x40   :  { %398 = vmatpush.xpose.msrb.mxu1 %v2346_v58  ;;  %501 = vmatpush.xpose.msrb.mxu3 %v2077_v16  ;;  %v2414_v58 = vld [vmem:[%s3855_s0 + $0xd0] sm:$0xff] }
  0x41   :  { %3894 = vst [vmem:[#allocation14_spill] sm:$0xff] %v2414_v58 }
  0x42   :  { %1743 = vmatpush.xpose.msk.msrb.mxu2 %vm105_vm0, %v2353_v59  ;;  %349 = vmatpush.xpose.msrb.mxu0 %v2358_v60  ;;  %v2390_v59 = vld [vmem:[%s3855_s0 + $0x108] sm:$0xff] }
  0x43   :  { %3892 = vst [vmem:[#allocation12_spill] sm:$0xff] %v2390_v59 }
  0x44   :  { %399 = vmatpush.xpose.msrb.mxu1 %v2370_v61  ;;  %502 = vmatpush.xpose.msrb.mxu3 %v2101_v20  ;;  %v2397_v61 = vld [vmem:[%s3855_s0 + $0xd8] sm:$0xff] }
  0x45   :  { %164 = vmatmul.f32.gmra.mxu0 %v2149_v28  ;;  %264 = vmatmul.f32.gmra.mxu2 %v2154_v29  ;;  %3893 = vst [vmem:[#allocation13_spill] sm:$0xff] %v2397_v61 }
  0x46   :  { %1744 = vmatpush.xpose.msk.msrb.mxu2 %vm105_vm0, %v2375_v62  ;;  %350 = vmatpush.xpose.msrb.mxu0 %v2380_v63  ;;  %v2404_v62 = vld [vmem:[%s3855_s0 + $0xc8] sm:$0xff] }
  0x47   :  { %214 = vmatmul.f32.gmra.mxu1 %v2159_v30  ;;  %314 = vmatmul.f32.gmra.mxu3 %v2164_v31 }
  0x48   :  { %400 = vmatpush.xpose.msrb.mxu1 %v2390_v59  ;;  %503 = vmatpush.xpose.msrb.mxu3 %v2125_v24  ;;  %v2423_v59 = vld [vmem:[%s3855_s0 + $0xa0] sm:$0xff] }
  0x4a   :  { %1745 = vmatpush.xpose.msk.msrb.mxu2 %vm105_vm0, %v2397_v61  ;;  %351 = vmatpush.xpose.msrb.mxu0 %v2404_v62  ;;  %v2430_v61 = vld [vmem:[%s3855_s0 + $0x90] sm:$0xff] }
  0x4c   :  { %401 = vmatpush.xpose.msrb.mxu1 %v2414_v58  ;;  %504 = vmatpush.xpose.msrb.mxu3 %v2149_v28  ;;  %v2435_v58 = vld [vmem:[%s3855_s0 + $0x98] sm:$0xff] }
  0x4d   :  { %167 = vmatmul.f32.gmra.mxu0 %v2125_v24  ;;  %267 = vmatmul.f32.gmra.mxu2 %v2130_v25  ;;  %v2455_v28 = vld [vmem:[%s3855_s0 + $0x58] sm:$0xff] }
  0x4e   :  { %1746 = vmatpush.xpose.msk.msrb.mxu2 %vm105_vm0, %v2423_v59  ;;  %352 = vmatpush.xpose.msrb.mxu0 %v2430_v61 }
  0x4f   :  { %217 = vmatmul.f32.gmra.mxu1 %v2135_v26  ;;  %317 = vmatmul.f32.gmra.mxu3 %v2140_v27 }
  0x50   :  { %402 = vmatpush.xpose.msrb.mxu1 %v2435_v58  ;;  %505 = vmatpush.xpose.msrb.mxu3 %v2173_v32  ;;  %v2473_v32 = vld [vmem:[%s3855_s0 + $0x30] sm:$0xff] }
  0x52   :  { %1747 = vmatpush.xpose.msk.msrb.mxu2 %vm105_vm0, %v2448_v56  ;;  %353 = vmatpush.xpose.msrb.mxu0 %v2455_v28 }
  0x54   :  { %506 = vmatpush.xpose.msrb.mxu3 %v2197_v36  ;;  %v2460_v36 = vld [vmem:[%s3855_s0 + $0x60] sm:$0xff] }
  0x55   :  { %170 = vmatmul.f32.gmra.mxu0 %v2101_v20  ;;  %270 = vmatmul.f32.gmra.mxu2 %v2106_v21 }
  0x56   :  { %403 = vmatpush.xpose.msrb.mxu1 %v2460_v36  ;;  %1748 = vmatpush.xpose.msk.msrb.mxu2 %vm105_vm0, %v2473_v32 }
  0x57   :  { %220 = vmatmul.f32.gmra.mxu1 %v2111_v22  ;;  %320 = vmatmul.f32.gmra.mxu3 %v2116_v23 }
  0x58   :  { %507 = vmatpush.xpose.msrb.mxu3 %v2221_v40  ;;  %v2485_v40 = vld [vmem:[%s3855_s0 + $0x28] sm:$0xff]  ;;  %354 = vmatpush.xpose.msrb.mxu0 %v2480_v55 }
  0x5a   :  { %404 = vmatpush.xpose.msrb.mxu1 %v2485_v40  ;;  %577 = vmatpush.xpose.msra.mxu2 %v2246_v45 }
  0x5c   :  { %517 = vmatpush.xpose.msra.mxu3 %v1991_v2  ;;  %537 = vmatpush.xpose.msra.mxu0 %v1986_v1 }
  0x5d   :  { %173 = vmatmul.f32.gmra.mxu0 %v2077_v16  ;;  %273 = vmatmul.f32.gmra.mxu2 %v2082_v17 }
  0x5e   :  { %557 = vmatpush.xpose.msra.mxu1 %v1998_v3  ;;  %578 = vmatpush.xpose.msra.mxu2 %v2270_v48 }
  0x5f   :  { %223 = vmatmul.f32.gmra.mxu1 %v2087_v18  ;;  %323 = vmatmul.f32.gmra.mxu3 %v2092_v19 }
  0x60   :  { %518 = vmatpush.xpose.msra.mxu3 %v2015_v6  ;;  %538 = vmatpush.xpose.msra.mxu0 %v2010_v5 }
  0x62   :  { %558 = vmatpush.xpose.msra.mxu1 %v2020_v7  ;;  %579 = vmatpush.xpose.msra.mxu2 %v2292_v51 }
  0x64   :  { %519 = vmatpush.xpose.msra.mxu3 %v2039_v10  ;;  %539 = vmatpush.xpose.msra.mxu0 %v2034_v9 }
  0x65   :  { %176 = vmatmul.f32.gmra.mxu0 %v2053_v12  ;;  %276 = vmatmul.f32.gmra.mxu2 %v2058_v13 }
  0x66   :  { %559 = vmatpush.xpose.msra.mxu1 %v2044_v11  ;;  %580 = vmatpush.xpose.msra.mxu2 %v2314_v54 }
  0x67   :  { %226 = vmatmul.f32.gmra.mxu1 %v2063_v14  ;;  %326 = vmatmul.f32.gmra.mxu3 %v2068_v15 }
  0x68   :  { %520 = vmatpush.xpose.msra.mxu3 %v2063_v14  ;;  %540 = vmatpush.xpose.msra.mxu0 %v2058_v13 }
  0x6a   :  { %560 = vmatpush.xpose.msra.mxu1 %v2068_v15  ;;  %581 = vmatpush.xpose.msra.mxu2 %v2336_v57  ;;  %v3901_v15 = vld [vmem:[#allocation8_spill] sm:$0xff] }
  0x6c   :  { %521 = vmatpush.xpose.msra.mxu3 %v2087_v18  ;;  %541 = vmatpush.xpose.msra.mxu0 %v2082_v17 }
  0x6d   :  { %179 = vmatmul.f32.gmra.mxu0 %v2029_v8  ;;  %279 = vmatmul.f32.gmra.mxu2 %v2034_v9 }
  0x6e   :  { %561 = vmatpush.xpose.msra.mxu1 %v2092_v19  ;;  %582 = vmatpush.xpose.msra.mxu2 %v2358_v60  ;;  %v3903_v19 = vld [vmem:[#allocation4_spill] sm:$0xff] }
  0x6f   :  { %229 = vmatmul.f32.gmra.mxu1 %v2039_v10  ;;  %329 = vmatmul.f32.gmra.mxu3 %v2044_v11  ;;  %v3899_v11 = vld [vmem:[#allocation14_spill] sm:$0xff] }
  0x70   :  { %522 = vmatpush.xpose.msra.mxu3 %v2111_v22  ;;  %542 = vmatpush.xpose.msra.mxu0 %v2106_v21 }
  0x72   :  { %562 = vmatpush.xpose.msra.mxu1 %v2116_v23  ;;  %583 = vmatpush.xpose.msra.mxu2 %v2380_v63  ;;  %v3905_v23 = vld [vmem:[#allocation10_spill] sm:$0xff] }
  0x74   :  { %523 = vmatpush.xpose.msra.mxu3 %v2135_v26  ;;  %543 = vmatpush.xpose.msra.mxu0 %v2130_v25 }
  0x75   :  { %182 = vmatmul.f32.gmra.mxu0 %v2005_v4  ;;  %282 = vmatmul.f32.gmra.mxu2 %v2010_v5 }
  0x76   :  { %563 = vmatpush.xpose.msra.mxu1 %v2140_v27  ;;  %584 = vmatpush.xpose.msra.mxu2 %v2404_v62  ;;  %v3907_v27 = vld [vmem:[#allocation12_spill] sm:$0xff] }
  0x77   :  { %232 = vmatmul.f32.gmra.mxu1 %v2015_v6  ;;  %332 = vmatmul.f32.gmra.mxu3 %v2020_v7  ;;  %v3897_v7 = vld [vmem:[#allocation7_spill] sm:$0xff] }
  0x78   :  { %524 = vmatpush.xpose.msra.mxu3 %v2159_v30  ;;  %544 = vmatpush.xpose.msra.mxu0 %v2154_v29 }
  0x7a   :  { %564 = vmatpush.xpose.msra.mxu1 %v2164_v31  ;;  %585 = vmatpush.xpose.msra.mxu2 %v2430_v61 }
  0x7c   :  { %525 = vmatpush.xpose.msra.mxu3 %v2183_v34  ;;  %545 = vmatpush.xpose.msra.mxu0 %v2178_v33 }
  0x7d   :  { %185 = vmatmul.f32.gmra.mxu0 %v1981_v0  ;;  %285 = vmatmul.f32.gmra.mxu2 %v1986_v1 }
  0x7e   :  { %565 = vmatpush.xpose.msra.mxu1 %v2188_v35  ;;  %586 = vmatpush.xpose.msra.mxu2 %v2455_v28 }
  0x7f   :  { %235 = vmatmul.f32.gmra.mxu1 %v1991_v2  ;;  %335 = vmatmul.f32.gmra.mxu3 %v1998_v3  ;;  %v1949_v3 = vmov 1.0  }
  0x80   :  { %526 = vmatpush.xpose.msra.mxu3 %v2207_v38  ;;  %546 = vmatpush.xpose.msra.mxu0 %v2202_v37 }
  0x82   :  { %566 = vmatpush.xpose.msra.mxu1 %v2212_v39  ;;  %587 = vmatpush.xpose.msra.mxu2 %v2480_v55 }
  0x84   :  { %527 = vmatpush.xpose.msra.mxu3 %v2231_v42  ;;  %547 = vmatpush.xpose.msra.mxu0 %v2226_v41 }
  0x85   :  { %355 = vmatmul.f32.vlgmr.msrb.gmra.mxu0 %v2480_v55  ;;  %1749 = vmatmul.msk.f32.vlgmr.msrb.gmra.mxu2 %vm105_vm0, %v2473_v32 }
  0x86   :  { %1312 = vmatpush.msrb.mxu2 %v1981_v0  ;;  %567 = vmatpush.xpose.msra.mxu1 %v2236_v43  ;;  %v3895_v0 = vld [vmem:[#allocation6_spill] sm:$0xff] }
  0x87   :  { %405 = vmatmul.f32.vlgmr.msrb.gmra.mxu1 %v2485_v40  ;;  %508 = vmatmul.f32.vlgmr.msrb.gmra.mxu3 %v1949_v3 }
  0x88   :  { %1313 = vmatpush.msrb.mxu2 %v2005_v4  ;;  %1760 = vmatpush.xpose.msk.msrb.mxu0 %vm105_vm0, %v2241_v44  ;;  %v3896_v4 = vld [vmem:[#allocation2_spill] sm:$0xff] }
  0x89   :  { %597 = vmatpush.xpose.msrb.mxu3 %v2258_v46 }
  0x8a   :  { %1314 = vmatpush.msrb.mxu2 %v2029_v8  ;;  %v3898_v8 = vld [vmem:[#allocation13_spill] sm:$0xff] }
  0x8c   :  { %1761 = vmatpush.xpose.msk.msrb.mxu0 %vm105_vm0, %v2265_v47  ;;  %1315 = vmatpush.msrb.mxu2 %v2053_v12  ;;  %v3900_v12 = vld [vmem:[#allocation3_spill] sm:$0xff] }
  0x8d   :  { %358 = vmatmul.f32.gmra.mxu0 %v2455_v28  ;;  %1750 = vmatmul.msk.f32.gmra.mxu2 %vm105_vm0, %v2448_v56 }
  0x8e   :  { %598 = vmatpush.xpose.msrb.mxu3 %v2282_v49  ;;  %1316 = vmatpush.msrb.mxu2 %v2077_v16  ;;  %v3902_v16 = vld [vmem:[#allocation9_spill] sm:$0xff] }
  0x8f   :  { %408 = vmatmul.f32.gmra.mxu1 %v2460_v36  ;;  %528 = vmatmul.f32.vlgmr.msra.gmra.mxu3 %v1949_v3 }
  0x90   :  { %1762 = vmatpush.xpose.msk.msrb.mxu0 %vm105_vm0, %v2287_v50  ;;  %1317 = vmatpush.msrb.mxu2 %v2101_v20  ;;  %v3904_v20 = vld [vmem:[#allocation5_spill] sm:$0xff] }
  0x92   :  { %599 = vmatpush.xpose.msrb.mxu3 %v2302_v52  ;;  %1318 = vmatpush.msrb.mxu2 %v2125_v24  ;;  %v3906_v24 = vld [vmem:[#allocation11_spill] sm:$0xff] }
  0x94   :  { %1763 = vmatpush.xpose.msk.msrb.mxu0 %vm105_vm0, %v2309_v53  ;;  %1319 = vmatpush.msrb.mxu2 %v3896_v4 }
  0x95   :  { %361 = vmatmul.f32.gmra.mxu0 %v2430_v61  ;;  %1751 = vmatmul.msk.f32.gmra.mxu2 %vm105_vm0, %v2423_v59 }
  0x96   :  { %600 = vmatpush.xpose.msrb.mxu3 %v3895_v0  ;;  %1320 = vmatpush.msrb.mxu2 %v3900_v12 }
  0x97   :  { %411 = vmatmul.f32.gmra.mxu1 %v2435_v58 }
  0x98   :  { %1764 = vmatpush.xpose.msk.msrb.mxu0 %vm105_vm0, %v3897_v7  ;;  %1321 = vmatpush.msrb.mxu2 %v3903_v19 }
  0x9a   :  { %601 = vmatpush.xpose.msrb.mxu3 %v3901_v15  ;;  %1322 = vmatpush.msrb.mxu2 %v3904_v20 }
  0x9c   :  { %1765 = vmatpush.xpose.msk.msrb.mxu0 %vm105_vm0, %v3902_v16 }
  0x9d   :  { %364 = vmatmul.f32.gmra.mxu0 %v2404_v62  ;;  %1752 = vmatmul.msk.f32.gmra.mxu2 %vm105_vm0, %v3898_v8 }
  0x9e   :  { %602 = vmatpush.xpose.msrb.mxu3 %v3905_v23 }
  0x9f   :  { %414 = vmatmul.f32.gmra.mxu1 %v3899_v11 }
  0xa0   :  { %1766 = vmatpush.xpose.msk.msrb.mxu0 %vm105_vm0, %v3906_v24 }
  0xa2   :  { %603 = vmatpush.xpose.msrb.mxu3 %v3907_v27 }
  0xa4   :  { %1767 = vmatpush.xpose.msk.msrb.mxu0 %vm105_vm0, %v3898_v8 }
  0xa5   :  { %367 = vmatmul.f32.gmra.mxu0 %v2380_v63  ;;  %1753 = vmatmul.msk.f32.gmra.mxu2 %vm105_vm0, %v3906_v24 }
  0xa6   :  { %604 = vmatpush.xpose.msrb.mxu3 %v3899_v11 }
  0xa7   :  { %417 = vmatmul.f32.gmra.mxu1 %v3907_v27 }
  0xa8   :  { %1768 = vmatpush.xpose.msk.msrb.mxu0 %vm105_vm0, %v2423_v59 }
  0xaa   :  { %v2606_v28 = vpop.f32.mrf.mxu0  ;;  %605 = vmatpush.xpose.msrb.mxu3 %v2435_v58 }
  0xac   :  { %v2608_v31 = vpop.f32.mrf.mxu1  ;;  %1769 = vmatpush.xpose.msk.msrb.mxu0 %vm105_vm0, %v2448_v56 }
  0xad   :  { %370 = vmatmul.f32.gmra.mxu0 %v2358_v60  ;;  %1754 = vmatmul.msk.f32.gmra.mxu2 %vm105_vm0, %v3902_v16 }
  0xae   :  { %606 = vmatpush.xpose.msrb.mxu3 %v2460_v36 }
  0xaf   :  { %420 = vmatmul.f32.gmra.mxu1 %v3905_v23 }
  0xb0   :  { %v2618_v35 = vpop.f32.mrf.mxu2  ;;  %1770 = vmatpush.xpose.msk.msrb.mxu0 %vm105_vm0, %v2473_v32 }
  0xb2   :  { %v2622_v39 = vpop.f32.mrf.mxu0  ;;  %607 = vmatpush.xpose.msrb.mxu3 %v2485_v40 }
  0xb4   :  { %v2624_v43 = vpop.f32.mrf.mxu1 }
  0xb5   :  { %373 = vmatmul.f32.gmra.mxu0 %v2336_v57  ;;  %1755 = vmatmul.msk.f32.gmra.mxu2 %vm105_vm0, %v3897_v7  ;;  %v210_v20 = vadd.f32 %v2624_v43, %v2622_v39 }
  0xb6   :  { %1362 = vmatpush.msra.mxu3 %v1991_v2 }
  0xb7   :  { %423 = vmatmul.f32.gmra.mxu1 %v3901_v15  ;;  %608 = vmatmul.f32.vlgmr.msrb.gmra.mxu3 %v1949_v3 }
  0xb8   :  { %v2634_v55 = vpop.f32.mrf.mxu2  ;;  %1363 = vmatpush.msra.mxu3 %v2015_v6 }
  0xba   :  { %v2637_v60 = vpop.f32.mrf.mxu0  ;;  %1364 = vmatpush.msra.mxu3 %v2039_v10 }
  0xbc   :  { %v2640_v61 = vpop.f32.mrf.mxu1  ;;  %1365 = vmatpush.msra.mxu3 %v2063_v14 }
  0xbd   :  { %376 = vmatmul.f32.gmra.mxu0 %v2314_v54  ;;  %1756 = vmatmul.msk.f32.gmra.mxu2 %vm105_vm0, %v2309_v53 }
  0xbe   :  { %1366 = vmatpush.msra.mxu3 %v2087_v18 }
  0xbf   :  { %426 = vmatmul.f32.gmra.mxu1 %v3895_v0 }
  0xc0   :  { %v2648_v57 = vpop.f32.mrf.mxu2  ;;  %1367 = vmatpush.msra.mxu3 %v2111_v22 }
  0xc2   :  { %v2651_v2 = vpop.f32.mrf.mxu0  ;;  %1368 = vmatpush.msra.mxu3 %v2135_v26 }
  0xc4   :  { %v2654_v62 = vpop.f32.mrf.mxu1  ;;  %1369 = vmatpush.msra.mxu3 %v2159_v30 }
  0xc5   :  { %379 = vmatmul.f32.gmra.mxu0 %v2292_v51  ;;  %1757 = vmatmul.msk.f32.gmra.mxu2 %vm105_vm0, %v2287_v50  ;;  %v216_v39 = vadd.f32 %v2654_v62, %v2651_v2 }
  0xc6   :  { %1370 = vmatpush.msra.mxu3 %v2183_v34 }
  0xc7   :  { %429 = vmatmul.f32.gmra.mxu1 %v2302_v52 }
  0xc8   :  { %v2662_v6 = vpop.f32.mrf.mxu2  ;;  %1371 = vmatpush.msra.mxu3 %v2207_v38 }
  0xca   :  { %v2665_v10 = vpop.f32.mrf.mxu0  ;;  %1372 = vmatpush.msra.mxu3 %v2231_v42  ;;  %v2705_v42 = vpop.f32.mrf.mxu3 }
  0xcc   :  { %v2668_v14 = vpop.f32.mrf.mxu1  ;;  %1562 = vmatpush.msrb.mxu3 %v2258_v46 }
  0xcd   :  { %382 = vmatmul.f32.gmra.mxu0 %v2270_v48  ;;  %1758 = vmatmul.msk.f32.gmra.mxu2 %vm105_vm0, %v2265_v47 }
  0xce   :  { %1563 = vmatpush.msrb.mxu3 %v2282_v49 }
  0xcf   :  { %432 = vmatmul.f32.gmra.mxu1 %v2282_v49 }
  0xd0   :  { %v2677_v18 = vpop.f32.mrf.mxu2  ;;  %1564 = vmatpush.msrb.mxu3 %v2302_v52 }
  0xd2   :  { %v2680_v22 = vpop.f32.mrf.mxu0  ;;  %1565 = vmatpush.msrb.mxu3 %v3895_v0 }
  0xd4   :  { %v2682_v26 = vpop.f32.mrf.mxu1  ;;  %1566 = vmatpush.msrb.mxu3 %v3901_v15 }
  0xd5   :  { %385 = vmatmul.f32.gmra.mxu0 %v2246_v45  ;;  %1759 = vmatmul.msk.f32.gmra.mxu2 %vm105_vm0, %v2241_v44 }
  0xd6   :  { %1567 = vmatpush.msrb.mxu3 %v3905_v23 }
  0xd7   :  { %435 = vmatmul.f32.gmra.mxu1 %v2258_v46 }
  0xd8   :  { %v2690_v30 = vpop.f32.mrf.mxu2  ;;  %1568 = vmatpush.msrb.mxu3 %v3907_v27  ;;  %v260_v27 = vadd.f32 %v2634_v55, %v210_v20  ;;  %v222_v55 = vadd.f32 %v2682_v26, %v2680_v22 }
  0xda   :  { %v2693_v34 = vpop.f32.mrf.mxu0  ;;  %1569 = vmatpush.msrb.mxu3 %v3899_v11  ;;  %v272_v62 = vadd.f32 %v2690_v30, %v222_v55 }
  0xdc   :  { %v2696_v38 = vpop.f32.mrf.mxu1  ;;  %1570 = vmatpush.msrb.mxu3 %v2435_v58 }
  0xdd   :  { %548 = vmatmul.f32.vlgmr.msra.gmra.mxu0 %v1949_v3  ;;  %588 = vmatmul.f32.vlgmr.msra.gmra.mxu2 %v1949_v3 }
  0xde   :  { %1412 = vmatpush.msra.mxu0 %v1986_v1  ;;  %1861 = vmatpush.msra.mxu2 %v1986_v1 }
  0xdf   :  { %568 = vmatmul.f32.vlgmr.msra.gmra.mxu1 %v1949_v3  ;;  %1571 = vmatpush.msrb.mxu3 %v2460_v36 }
  0xe0   :  { %v2707_v45 = vpop.f32.mrf.mxu2  ;;  %1413 = vmatpush.msra.mxu0 %v2010_v5  ;;  %1863 = vmatpush.msra.mxu2 %v2010_v5  ;;  %v2730_v5 = vpop.f32.mrf.mxu3 }
  0xe1   :  { %1572 = vmatpush.msrb.mxu3 %v2485_v40 }
  0xe2   :  { %v2712_v46 = vpop.f32.mrf.mxu0  ;;  %1414 = vmatpush.msra.mxu0 %v2034_v9  ;;  %1865 = vmatpush.msra.mxu2 %v2034_v9 }
  0xe4   :  { %v2715_v48 = vpop.f32.mrf.mxu1  ;;  %1415 = vmatpush.msra.mxu0 %v2058_v13  ;;  %1867 = vmatpush.msra.mxu2 %v2058_v13 }
  0xe5   :  { %1771 = vmatmul.msk.f32.vlgmr.msrb.gmra.mxu0 %vm105_vm0, %v1949_v3 }
  0xe6   :  { %1416 = vmatpush.msra.mxu0 %v2082_v17  ;;  %1869 = vmatpush.msra.mxu2 %v2082_v17 }
  0xe8   :  { %v2726_v1 = vpop.f32.mrf.mxu2  ;;  %1417 = vmatpush.msra.mxu0 %v2106_v21  ;;  %1871 = vmatpush.msra.mxu2 %v2106_v21 }
  0xea   :  { %v2732_v9 = vpop.f32.mrf.mxu0  ;;  %1418 = vmatpush.msra.mxu0 %v2130_v25  ;;  %1873 = vmatpush.msra.mxu2 %v2130_v25  ;;  %v312_v25 = vpop.f32.mrf.mxu3 }
  0xec   :  { %v2735_v36 = vpop.f32.mrf.mxu1  ;;  %1419 = vmatpush.msra.mxu0 %v2154_v29  ;;  %1875 = vmatpush.msra.mxu2 %v2154_v29 }
  0xed   :  { %v231_v30 = vadd.f32 %v2735_v36, %v2732_v9 }
  0xee   :  { %1420 = vmatpush.msra.mxu0 %v2178_v33  ;;  %1877 = vmatpush.msra.mxu2 %v2178_v33 }
  0xf0   :  { %v2742_v13 = vpop.f32.mrf.mxu2  ;;  %1421 = vmatpush.msra.mxu0 %v2202_v37  ;;  %1879 = vmatpush.msra.mxu2 %v2202_v37 }
  0xf2   :  { %v2746_v17 = vpop.f32.mrf.mxu0  ;;  %1422 = vmatpush.msra.mxu0 %v2226_v41  ;;  %1881 = vmatpush.msra.mxu2 %v2226_v41  ;;  %v315_v40 = vpop.f32.mrf.mxu3 }
  0xf4   :  { %v2749_v21 = vpop.f32.mrf.mxu1  ;;  %1612 = vmatpush.msrb.mxu0 %v2241_v44 }
  0xf6   :  { %1613 = vmatpush.msrb.mxu0 %v2265_v47 }
  0xf8   :  { %1614 = vmatpush.msrb.mxu0 %v2287_v50  ;;  %v2755_v29 = vpop.f32.mrf.mxu2 }
  0xfa   :  { %1615 = vmatpush.msrb.mxu0 %v2309_v53  ;;  %v2758_v33 = vpop.f32.mrf.mxu0  ;;  %v318_v49 = vpop.f32.mrf.mxu3 }
  0xfb   :  { %3908 = vst [vmem:[#allocation6_spill] sm:$0xff] %v2758_v33  ;;  %v213_v33 = vadd.f32 %v2640_v61, %v2637_v60 }
  0xfc   :  { %v2760_v37 = vpop.f32.mrf.mxu1  ;;  %1616 = vmatpush.msrb.mxu0 %v3897_v7 }
  0xfd   :  { %3909 = vst [vmem:[#allocation2_spill] sm:$0xff] %v2760_v37 }
  0xfe   :  { %1617 = vmatpush.msrb.mxu0 %v3902_v16 }
 0x100   :  { %1618 = vmatpush.msrb.mxu0 %v3906_v24  ;;  %v2765_v41 = vpop.f32.mrf.mxu2  ;;  %v207_v24 = vadd.f32 %v2608_v31, %v2606_v28  ;;  %v219_v28 = vadd.f32 %v2668_v14, %v2665_v10  ;;  %v225_v10 = vadd.f32 %v2696_v38, %v2693_v34 }
 0x101   :  { %3910 = vst [vmem:[#allocation7_spill] sm:$0xff] %v2765_v41 }
 0x102   :  { %1619 = vmatpush.msrb.mxu0 %v3898_v8  ;;  %v356_v44 = vpop.f32.mrf.mxu0  ;;  %v321_v54 = vpop.f32.mrf.mxu3  ;;  %v257_v37 = vadd.f32 %v2618_v35, %v207_v24  ;;  %v266_v35 = vadd.f32 %v2662_v6, %v216_v39  ;;  %v269_v61 = vadd.f32 %v2677_v18, %v219_v28  ;;  %v228_v6 = vadd.f32 %v2715_v48, %v2712_v46 }
 0x103   :  { %v275_v18 = vadd.f32 %v2707_v45, %v225_v10  ;;  %v322_v38 = vadd.f32 %v321_v54, %v272_v62  ;;  %v281_v48 = vadd.f32 %v2742_v13, %v231_v30  ;;  %v234_v45 = vadd.f32 %v2749_v21, %v2746_v17 }
 0x104   :  { %v406_v47 = vpop.f32.mrf.mxu1  ;;  %1620 = vmatpush.msrb.mxu0 %v2423_v59  ;;  %v307_v43 = vadd.f32 %v2705_v42, %v257_v37  ;;  %v316_v26 = vadd.f32 %v315_v40, %v266_v35  ;;  %v3917_v35 = vld [vmem:[#allocation2_spill] sm:$0xff] }
 0x106   :  { %1621 = vmatpush.msrb.mxu0 %v2448_v56  ;;  %v357_v14 = vadd.f32 %v356_v44, %v307_v43  ;;  %v3916_v43 = vld [vmem:[#allocation6_spill] sm:$0xff] }
 0x108   :  { %1622 = vmatpush.msrb.mxu0 %v2473_v32  ;;  %v2771_v50 = vpop.f32.mrf.mxu2  ;;  %v407_v44 = vadd.f32 %v406_v47, %v357_v14 }
 0x10a   :  { %v359_v51 = vpop.f32.mrf.mxu0  ;;  %v324_v7 = vpop.f32.mrf.mxu3  ;;  %v2836_v9 = vadd.f32 %v2771_v50, %v407_v44 }
 0x10c   :  { %v409_v52 = vpop.f32.mrf.mxu1 }
 0x110   :  { %v459_v53 = vpop.f32.mrf.mxu2 }
 0x112   :  { %v362_v58 = vpop.f32.mrf.mxu0  ;;  %v327_v32 = vpop.f32.mrf.mxu3 }
 0x114   :  { %v412_v63 = vpop.f32.mrf.mxu1 }
 0x118   :  { %v2773_v3 = vpop.f32.mrf.mxu2 }
 0x11a   :  { %v365_v0 = vpop.f32.mrf.mxu0  ;;  %v330_v16 = vpop.f32.mrf.mxu3 }
 0x11b   :  { %v366_v46 = vadd.f32 %v365_v0, %v316_v26 }
 0x11c   :  { %v2775_v4 = vpop.f32.mrf.mxu1 }
 0x120   :  { %v2777_v59 = vpop.f32.mrf.mxu2 }
 0x122   :  { %v368_v56 = vpop.f32.mrf.mxu0 }
 0x124   :  { %v2779_v8 = vpop.f32.mrf.mxu1 }
 0x128   :  { %v2781_v11 = vpop.f32.mrf.mxu2 }
 0x129   :  { %3911 = vst [vmem:[#allocation13_spill] sm:$0xff] %v2781_v11  ;;  %v263_v11 = vadd.f32 %v2648_v57, %v213_v33 }
 0x12a   :  { %v371_v12 = vpop.f32.mrf.mxu0 }
 0x12b   :  { %v313_v2 = vadd.f32 %v312_v25, %v263_v11  ;;  %v278_v25 = vadd.f32 %v2726_v1, %v228_v6  ;;  %v372_v50 = vadd.f32 %v371_v12, %v322_v38 }
 0x12c   :  { %v2783_v15 = vpop.f32.mrf.mxu1 }
 0x12d   :  { %3912 = vst [vmem:[#allocation14_spill] sm:$0xff] %v2783_v15  ;;  %v633_v15 = vlaneseq  ;;  %v328_v47 = vadd.f32 %v327_v32, %v278_v25  ;;  %v3919_v25 = vld [vmem:[#allocation7_spill] sm:$0xff] }
 0x12f   :  { %v2812_v57 = vshrl.u32 %v633_v15, 7  ;;  %v2826_v34 = vand.u32 127, %v633_v15 }
 0x130   :  { %v2785_v19 = vpop.f32.mrf.mxu2  ;;  %v3914_v24 = vld [vmem:[#allocation13_spill] sm:$0xff] }
 0x131   :  { %3913 = vst [vmem:[#allocation3_spill] sm:$0xff] %v2785_v19  ;;  %v310_v19 = vadd.f32 %v2730_v5, %v260_v27  ;;  %v333_v5 = vpop.f32.mrf.mxu3  ;;  %v635_v22 = vadd.s32 8, %v2812_v57  ;;  %v636_v40 = vadd.s32 16, %v2812_v57  ;;  %vm647_vm2 = vcmp.eq.s32.totalorder %v2812_v57, %v2826_v34 }
 0x132   :  { %v2789_v23 = vpop.f32.mrf.mxu0  ;;  %v637_v13 = vadd.s32 24, %v2812_v57  ;;  %v639_v12 = vadd.s32 40, %v2812_v57  ;;  %v640_v55 = vadd.s32 48, %v2812_v57  ;;  %v641_v6 = vadd.s32 56, %v2812_v57 }
 0x133   :  { %v360_v60 = vadd.f32 %v359_v51, %v310_v19  ;;  %v363_v51 = vadd.f32 %v362_v58, %v313_v2  ;;  %v319_v19 = vadd.f32 %v318_v49, %v269_v61  ;;  %vm648_vm1 = vcmp.eq.s32.totalorder %v635_v22, %v2826_v34 }
 0x134   :  { %v2794_v41 = vpop.f32.mrf.mxu1  ;;  %v325_v49 = vadd.f32 %v324_v7, %v275_v18  ;;  %v416_v58 = vadd.f32 %v2775_v4, %v366_v46  ;;  %vm649_vm4 = vcmp.eq.s32.totalorder %v636_v40, %v2826_v34  ;;  %vm650_vm5 = vcmp.eq.s32.totalorder %v637_v13, %v2826_v34  ;;  %v3915_v39 = vld [vmem:[#allocation14_spill] sm:$0xff] }
 0x135   :  { %v410_v37 = vadd.f32 %v409_v52, %v360_v60  ;;  %v413_v36 = vadd.f32 %v412_v63, %v363_v51  ;;  %v369_v52 = vadd.f32 %v368_v56, %v319_v19  ;;  %v331_v63 = vadd.f32 %v330_v16, %v281_v48 }
 0x136   :  { %v658_v56 = vsel %vm647_vm2, %v2836_v9, 0.0  ;;  %v2851_v32 = vadd.f32 %v2777_v59, %v416_v58  ;;  %v422_v28 = vadd.f32 %v3915_v39, %v372_v50  ;;  %vm652_vm7 = vcmp.eq.s32.totalorder %v639_v12, %v2826_v34 }
 0x137   :  { %v2828_v11 = vadd.f32 %v459_v53, %v410_v37  ;;  %v284_v53 = vadd.f32 %v2755_v29, %v234_v45  ;;  %v2844_v54 = vadd.f32 %v2773_v3, %v413_v36  ;;  %v638_v29 = vadd.s32 32, %v2812_v57 }
 0x138   :  { %v2805_v31 = vpop.f32.mrf.mxu2  ;;  %v419_v15 = vadd.f32 %v2779_v8, %v369_v52  ;;  %v375_v3 = vadd.f32 %v2789_v23, %v325_v49  ;;  %v237_v8 = vadd.f32 %v3917_v35, %v3916_v43  ;;  %v670_v23 = vsel %vm669_vm3, %v658_v56, 0.0 }
 0x139   :  { %v659_v21 = vsel %vm648_vm1, %v2828_v11, 0.0  ;;  %v336_v7 = vpop.f32.mrf.mxu3  ;;  %v334_v20 = vadd.f32 %v333_v5, %v284_v53  ;;  %v660_v16 = vsel %vm649_vm4, %v2844_v54, 0.0  ;;  %vm651_vm6 = vcmp.eq.s32.totalorder %v638_v29, %v2826_v34  ;;  %v3918_v5 = vld [vmem:[#allocation3_spill] sm:$0xff] }
 0x13a   :  { %v377_v33 = vpop.f32.mrf.mxu0  ;;  %v671_v4 = vsel %vm669_vm3, %v659_v21, 0.0  ;;  %v2860_v27 = vadd.f32 %v3914_v24, %v419_v15  ;;  %v661_v61 = vsel %vm650_vm5, %v2851_v32, 0.0  ;;  %v2870_v2 = vadd.f32 %v3918_v5, %v422_v28 }
 0x13b   :  { %v378_v59 = vadd.f32 %v377_v33, %v328_v47  ;;  %v425_v62 = vadd.f32 %v2794_v41, %v375_v3  ;;  %v672_v14 = vadd.f32 %v671_v4, %v670_v23  ;;  %v673_v33 = vsel %vm669_vm3, %v660_v16, 0.0 }
 0x13c   :  { %v2817_v42 = vpop.f32.mrf.mxu1  ;;  %v662_v26 = vsel %vm651_vm6, %v2860_v27, 0.0  ;;  %v287_v41 = vadd.f32 %v3919_v25, %v237_v8  ;;  %v675_v30 = vsel %vm669_vm3, %v661_v61, 0.0  ;;  %vm653_vm8 = vcmp.eq.s32.totalorder %v640_v55, %v2826_v34 }
 0x13d   :  { %v2878_v18 = vadd.f32 %v2805_v31, %v425_v62  ;;  %v428_v37 = vadd.f32 %v2817_v42, %v378_v59  ;;  %v642_v44 = vadd.s32 64, %v2812_v57  ;;  %v674_v46 = vadd.f32 %v673_v33, %v672_v14 }
 0x13e   :  { %v663_v48 = vsel %vm652_vm7, %v2870_v2, 0.0  ;;  %v677_v31 = vsel %vm669_vm3, %v662_v26, 0.0  ;;  %vm654_vm9 = vcmp.eq.s32.totalorder %v641_v6, %v2826_v34  ;;  %v643_v42 = vadd.s32 72, %v2812_v57 }
 0x13f   :  { %v676_v49 = vadd.f32 %v675_v30, %v674_v46  ;;  %v664_v36 = vsel %vm653_vm8, %v2878_v18, 0.0  ;;  %v679_v53 = vsel %vm669_vm3, %v663_v48, 0.0  ;;  %vm655_vm10 = vcmp.eq.s32.totalorder %v642_v44, %v2826_v34 }
 0x140   :  { %v477_v1 = vpop.f32.mrf.mxu2  ;;  %v681_v50 = vsel %vm669_vm3, %v664_v36, 0.0  ;;  %vm656_vm11 = vcmp.eq.s32.totalorder %v643_v42, %v2826_v34 }
 0x141   :  { %v509_v38 = vpop.f32.mrf.mxu3  ;;  %v478_v45 = vadd.f32 %v477_v1, %v428_v37  ;;  %v678_v21 = vadd.f32 %v677_v31, %v676_v49  ;;  %v1921_v31 = vld [vmem:[%s3855_s0 + $0x128] sm:$0xff]  ;;  %v1922_v49 = vld [vmem:[%s3855_s0 + $0xf0] sm:$0xff] }
 0x142   :  { %v380_v17 = vpop.f32.mrf.mxu0 }
 0x143   :  { %v381_v10 = vadd.f32 %v380_v17, %v331_v63  ;;  %v337_v17 = vadd.f32 %v336_v7, %v287_v41  ;;  %v665_v1 = vsel %vm654_vm9, %v478_v45, 0.0  ;;  %v680_v63 = vadd.f32 %v679_v53, %v678_v21  ;;  %v1924_v53 = vld [vmem:[%s3855_s0 + $0x80] sm:$0xff]  ;;  %v1925_v21 = vld [vmem:[%s3855_s0 + $0x48] sm:$0xff] }
 0x144   :  { %v430_v0 = vpop.f32.mrf.mxu1  ;;  %v683_v3 = vsel %vm669_vm3, %v665_v1, 0.0 }
 0x145   :  { %v431_v40 = vadd.f32 %v430_v0, %v381_v10  ;;  %v682_v4 = vadd.f32 %v681_v50, %v680_v63  ;;  %v98_v63 = vld [vmem:[%s3857_s1 + $0x20] sm:$0xff] }
 0x147   :  { %v684_v24 = vadd.f32 %v683_v3, %v682_v4 }
 0x148   :  { %v480_v60 = vpop.f32.mrf.mxu2 }
 0x149   :  { %v481_v52 = vadd.f32 %v480_v60, %v431_v40  ;;  %v529_v16 = vpop.f32.mrf.mxu3 }
 0x14a   :  { %v383_v22 = vpop.f32.mrf.mxu0  ;;  %v530_v43 = vadd.f32 %v529_v16, %v509_v38  ;;  %v97_v16 = vld [vmem:[%s3857_s1 + $0x18] sm:$0xff] }
 0x14b   :  { %v384_v51 = vadd.f32 %v383_v22, %v334_v20  ;;  %v666_v29 = vsel %vm655_vm10, %v481_v52, 0.0  ;;  %v644_v20 = vadd.s32 80, %v2812_v57 }
 0x14c   :  { %v433_v19 = vpop.f32.mrf.mxu1  ;;  %v685_v7 = vsel %vm669_vm3, %v666_v29, 0.0  ;;  %v96_v29 = vld [vmem:[%s3857_s1 + $0x10] sm:$0xff] }
 0x14d   :  { %v434_v47 = vadd.f32 %v433_v19, %v384_v51  ;;  %vm657_vm12 = vcmp.eq.s32.totalorder %v644_v20, %v2826_v34  ;;  %v686_v35 = vadd.f32 %v685_v7, %v684_v24 }
 0x150   :  { %v483_v13 = vpop.f32.mrf.mxu2 }
 0x151   :  { %v484_v58 = vadd.f32 %v483_v13, %v434_v47  ;;  %v609_v6 = vpop.f32.mrf.mxu3  ;;  %v701_v13 = vld [vmem:[%s3856_s2] sm:$0x1] }
 0x152   :  { %v386_v0 = vpop.f32.mrf.mxu0 }
 0x153   :  { %v387_v56 = vadd.f32 %v386_v0, %v337_v17  ;;  %v667_v12 = vsel %vm656_vm11, %v484_v58, 0.0  ;;  %v94_v0 = vld [vmem:[%s3857_s1] sm:$0xff] }
 0x154   :  { %v436_v15 = vpop.f32.mrf.mxu1  ;;  %v687_v28 = vsel %vm669_vm3, %v667_v12, 0.0  ;;  %v99_v12 = vld [vmem:[%s3857_s1 + $0x28] sm:$0xff] }
 0x155   :  { %v437_v39 = vadd.f32 %v436_v15, %v387_v56  ;;  %v688_v55 = vadd.f32 %v687_v28, %v686_v35  ;;  %v95_v28 = vld [vmem:[%s3857_s1 + $0x8] sm:$0xff] }
 0x156   :  { %v1927_v35 = vld [vmem:[%s3855_s0 + $0x248] sm:$0xff] }
 0x158   :  { %v486_v59 = vpop.f32.mrf.mxu2 }
 0x159   :  { %v487_v8 = vadd.f32 %v486_v59, %v437_v39 }
 0x15a   :  { %v549_v23 = vpop.f32.mrf.mxu0 }
 0x15b   :  { %v668_v60 = vsel %vm657_vm12, %v487_v8, 0.0  ;;  %v550_v61 = vadd.f32 %v549_v23, %v530_v43  ;;  %811 = vmatpush.msrb.mxu1 %v487_v8  ;;  %v104_v43 = vld [vmem:[%s3857_s1 + $0x50] sm:$0xff] }
 0x15c   :  { %v689_v57 = vsel %vm669_vm3, %v668_v60, 0.0  ;;  %v569_v5 = vpop.f32.mrf.mxu1 }
 0x15d   :  { %v690_v62 = vadd.f32 %v689_v57, %v688_v55  ;;  %812 = vmatpush.msrb.mxu1 %v484_v58  ;;  %v570_v14 = vadd.f32 %v569_v5, %v550_v61  ;;  %v1926_v58 = vld [vmem:[%s3855_s0 + $0x10] sm:$0xff] }
 0x15e   :  { %v1928_v5 = vld [vmem:[%s3855_s0 + $0x210] sm:$0xff] }
 0x15f   :  { %v691_v10 = vrot.slane %v690_v62, 4  ;;  %813 = vmatpush.msrb.mxu1 %v481_v52  ;;  %v1923_v52 = vld [vmem:[%s3855_s0 + $0xb8] sm:$0xff] }
 0x160   :  { %v589_v33 = vpop.f32.mrf.mxu2 }
 0x161   :  { %v692_v22 = vadd.f32 %v691_v10, %v690_v62  ;;  %v590_v34 = vadd.f32 %v589_v33, %v570_v14  ;;  %814 = vmatpush.msrb.mxu1 %v478_v45  ;;  %v1929_v14 = vld [vmem:[%s3855_s0 + $0x1d8] sm:$0xff] }
 0x162   :  { %v629_v26 = vpop.f32.mrf.mxu0 }
 0x163   :  { %v693_v37 = vrot.slane %v692_v22, 2  ;;  %v610_v51 = vadd.f32 %v609_v6, %v590_v34  ;;  %815 = vmatpush.msrb.mxu1 %v2878_v18  ;;  %v102_v6 = vld [vmem:[%s3857_s1 + $0x40] sm:$0xff]  ;;  %v101_v34 = vld [vmem:[%s3857_s1 + $0x38] sm:$0xff] }
 0x165   :  { %v630_v19 = vadd.f32 %v629_v26, %v610_v51  ;;  %v694_v25 = vadd.f32 %v693_v37, %v692_v22  ;;  %816 = vmatpush.msrb.mxu1 %v2870_v2  ;;  %v1916_v2 = vld [vmem:[%s3855_s0 + $0x240] sm:$0xff]  ;;  %v100_v22 = vld [vmem:[%s3857_s1 + $0x30] sm:$0xff] }
 0x166   :  { %v1930_v26 = vld [vmem:[%s3855_s0 + $0x1a0] sm:$0xff] }
 0x167   :  { %v632_v41 = vmul.f32 0.0012755102, %v630_v19  ;;  %v695_v30 = vrot.slane %v694_v25, 1  ;;  %817 = vmatpush.msrb.mxu1 %v2860_v27 }
 0x169   :  { %v696_v38 = vadd.f32 %v695_v30, %v694_v25  ;;  %818 = vmatpush.msrb.mxu1 %v2851_v32  ;;  %v698_v46 = vmul.f32 %v632_v41, %v632_v41  ;;  %v1917_v32 = vld [vmem:[%s3855_s0 + $0x208] sm:$0xff]  ;;  %v2952_v15 = vperm.slane %v632_v41, 0 }
 0x16b   :  { %v697_v44 = vmul.f32 0.0012755102, %v696_v38  ;;  %819 = vmatpush.msrb.mxu1 %v2844_v54  ;;  %v1918_v54 = vld [vmem:[%s3855_s0 + $0x1d0] sm:$0xff]  ;;  %v1931_v38 = vld [vmem:[%s3855_s0 + $0x168] sm:$0xff] }
 0x16d   :  { %v699_v48 = vsub.f32 %v697_v44, %v698_v46  ;;  %820 = vmatpush.msrb.mxu1 %v2828_v11  ;;  %v1919_v11 = vld [vmem:[%s3855_s0 + $0x198] sm:$0xff] }
 0x16f   :  { %v700_v45 = vmax.f32 %v699_v48, 0.0  ;;  %821 = vmatpush.msrb.mxu1 %v2836_v9  ;;  %v1920_v9 = vld [vmem:[%s3855_s0 + $0x160] sm:$0xff]  ;;  %v1932_v48 = vld [vmem:[%s3855_s0 + $0x130] sm:$0xff] }
 0x171   :  { %1860 = vmatpush.msra.mxu1 %v1916_v2  ;;  %v702_v18 = vadd.f32 1e-05, %v700_v45  ;;  %v103_v2 = vld [vmem:[%s3857_s1 + $0x48] sm:$0xff] }
 0x173   :  { %1862 = vmatpush.msra.mxu1 %v1917_v32  ;;  %1892 = vrsqrt.f32 %v702_v18  ;;  %vm709_vm14 = vweird.f32 %v702_v18 }
 0x175   :  { %1864 = vmatpush.msra.mxu1 %v1918_v54 }
 0x177   :  { %1866 = vmatpush.msra.mxu1 %v1919_v11 }
 0x179   :  { %1868 = vmatpush.msra.mxu1 %v1920_v9  ;;  %v1893_v27 = vpop.eup %1892 }
 0x17a   :  { %v704_v40 = vmul.f32 %v1893_v27, %v702_v18  ;;  %vm710_vm13 = vweird.f32 %v1893_v27  ;;  %v1933_v18 = vld [vmem:[%s3855_s0 + $0xf8] sm:$0xff] }
 0x17b   :  { %1870 = vmatpush.msra.mxu1 %v1921_v31  ;;  %vm711_vm15 = vmor %vm709_vm14, %vm710_vm13  ;;  %v1935_v31 = vld [vmem:[%s3855_s0 + $0x88] sm:$0xff] }
 0x17c   :  { %v705_v42 = vmul.f32 %v1893_v27, %v704_v40 }
 0x17d   :  { %1872 = vmatpush.msra.mxu1 %v1922_v49 }
 0x17e   :  { %v706_v36 = vmul.f32 0.5, %v705_v42  ;;  %v1936_v42 = vld [vmem:[%s3855_s0 + $0x50] sm:$0xff] }
 0x17f   :  { %1874 = vmatpush.msra.mxu1 %v1923_v52 }
 0x180   :  { %v707_v47 = vsub.f32 1.5, %v706_v36  ;;  %v1937_v36 = vld [vmem:[%s3855_s0 + $0x18] sm:$0xff] }
 0x181   :  { %1876 = vmatpush.msra.mxu1 %v1924_v53 }
 0x182   :  { %v708_v17 = vmul.f32 %v1893_v27, %v707_v47 }
 0x183   :  { %1878 = vmatpush.msra.mxu1 %v1925_v21 }
 0x184   :  { %v712_v1 = vsel %vm711_vm15, %v1893_v27, %v708_v17  ;;  %v1934_v27 = vld [vmem:[%s3855_s0 + $0xc0] sm:$0xff] }
 0x185   :  { %1880 = vmatpush.msra.mxu1 %v1926_v58  ;;  %v713_v50 = vmul.f32 %v712_v1, %v701_v13 }
 0x187   :  { %v715_v56 = vperm.slane %v713_v50, 0 }
 0x189   :  { %v2954_v3 = vmul.f32 %v715_v56, %v94_v0  ;;  %v2956_v20 = vmul.f32 %v715_v56, %v98_v63  ;;  %v2958_v4 = vmul.f32 %v715_v56, %v96_v29  ;;  %v2977_v59 = vmul.f32 %v715_v56, %v99_v12 }
 0x18a   :  { %v2988_v60 = vmul.f32 %v715_v56, %v97_v16  ;;  %v2990_v61 = vmul.f32 %v715_v56, %v95_v28  ;;  %v2992_v57 = vmul.f32 %v715_v56, %v104_v43  ;;  %v3022_v19 = vmul.f32 %v715_v56, %v102_v6 }
 0x18b   :  { %1772 = vmatmul.msk.f32.vlgmr.msrb.gmra.mxu1 %vm669_vm3, %v2954_v3  ;;  %v733_v7 = vmul.f32 %v2952_v15, %v2956_v20  ;;  %v731_v24 = vmul.f32 %v2952_v15, %v2958_v4  ;;  %v729_v39 = vmul.f32 %v2952_v15, %v2954_v3  ;;  %v734_v62 = vmul.f32 %v2952_v15, %v2977_v59 }
 0x18c   :  { %1462 = vmatpush.msrb.mxu1 %v1927_v35  ;;  %v732_v10 = vmul.f32 %v2952_v15, %v2988_v60  ;;  %v730_v33 = vmul.f32 %v2952_v15, %v2990_v61  ;;  %v3024_v25 = vmul.f32 %v715_v56, %v100_v22  ;;  %v3027_v30 = vmul.f32 %v715_v56, %v101_v34 }
 0x18d   :  { %v752_v8 = vsel %vm669_vm3, %v733_v7, 0.0  ;;  %v746_v23 = vsel %vm669_vm3, %v731_v24, 0.0  ;;  %v740_v55 = vsel %vm669_vm3, %v729_v39, 0.0  ;;  %v755_v37 = vsel %vm669_vm3, %v734_v62, 0.0 }
 0x18e   :  { %753 = vadd.xlane.f32.xlu2 %v752_v8  ;;  %747 = vadd.xlane.f32.xlu1 %v746_v23  ;;  %v749_v51 = vsel %vm669_vm3, %v732_v10, 0.0  ;;  %v743_v41 = vsel %vm669_vm3, %v730_v33, 0.0  ;;  %v737_v44 = vmul.f32 %v2952_v15, %v3022_v19  ;;  %v735_v46 = vmul.f32 %v2952_v15, %v3024_v25 }
 0x18f   :  { %741 = vadd.xlane.f32.xlu0 %v740_v55  ;;  %1463 = vmatpush.msrb.mxu1 %v1928_v5  ;;  %v736_v45 = vmul.f32 %v2952_v15, %v3027_v30  ;;  %v3051_v11 = vmul.f32 %v715_v56, %v103_v2  ;;  %v739_v56 = vmul.f32 %v2952_v15, %v2992_v57 }
 0x190   :  { %v764_v32 = vsel %vm669_vm3, %v737_v44, 0.0  ;;  %v758_v54 = vsel %vm669_vm3, %v735_v46, 0.0 }
 0x191   :  { %1464 = vmatpush.msrb.mxu1 %v1929_v14  ;;  %v761_v9 = vsel %vm669_vm3, %v736_v45, 0.0  ;;  %v738_v40 = vmul.f32 %v2952_v15, %v3051_v11  ;;  %v770_v7 = vsel %vm669_vm3, %v739_v56, 0.0 }
 0x193   :  { %1773 = vmatmul.msk.f32.gmra.mxu1 %vm669_vm3, %v2990_v61  ;;  %v767_v49 = vsel %vm669_vm3, %v738_v40, 0.0 }
 0x194   :  { %1465 = vmatpush.msrb.mxu1 %v1930_v26 }
 0x196   :  { %756 = vadd.xlane.f32.xlu2 %v755_v37  ;;  %750 = vadd.xlane.f32.xlu1 %v749_v51 }
 0x197   :  { %744 = vadd.xlane.f32.xlu0 %v743_v41  ;;  %1466 = vmatpush.msrb.mxu1 %v1931_v38 }
 0x199   :  { %1467 = vmatpush.msrb.mxu1 %v1932_v48 }
 0x19b   :  { %1774 = vmatmul.msk.f32.gmra.mxu1 %vm669_vm3, %v2958_v4 }
 0x19c   :  { %1468 = vmatpush.msrb.mxu1 %v1933_v18 }
 0x19e   :  { %765 = vadd.xlane.f32.xlu2 %v764_v32  ;;  %759 = vadd.xlane.f32.xlu1 %v758_v54 }
 0x19f   :  { %762 = vadd.xlane.f32.xlu0 %v761_v9  ;;  %1469 = vmatpush.msrb.mxu1 %v1934_v27 }
 0x1a1   :  { %1470 = vmatpush.msrb.mxu1 %v1935_v31 }
 0x1a3   :  { %1775 = vmatmul.msk.f32.gmra.mxu1 %vm669_vm3, %v2988_v60 }
 0x1a4   :  { %1471 = vmatpush.msrb.mxu1 %v1936_v42 }
 0x1a6   :  { %768 = vadd.xlane.f32.xlu1 %v767_v49  ;;  %1472 = vmatpush.msrb.mxu1 %v1937_v36 }
 0x1ab   :  { %1776 = vmatmul.msk.f32.gmra.mxu1 %vm669_vm3, %v2956_v20 }
 0x1b3   :  { %1777 = vmatmul.msk.f32.gmra.mxu1 %vm669_vm3, %v2977_v59 }
 0x1bb   :  { %1778 = vmatmul.msk.f32.gmra.mxu1 %vm669_vm3, %v3024_v25 }
 0x1c3   :  { %1779 = vmatmul.msk.f32.gmra.mxu1 %vm669_vm3, %v3027_v30 }
 0x1cb   :  { %1780 = vmatmul.msk.f32.gmra.mxu1 %vm669_vm3, %v3022_v19 }
 0x1d3   :  { %1781 = vmatmul.msk.f32.gmra.mxu1 %vm669_vm3, %v3051_v11 }
 0x1db   :  { %1782 = vmatmul.msk.f32.gmra.mxu1 %vm669_vm3, %v2992_v57 }
 0x201   :  { %v3097_v12 = vpop.xlane.xlu1 %747  ;;  %v3110_v33 = vpop.xlane.xlu2 %753 }
 0x202   :  { %v3085_v52 = vpop.xlane.xlu0 %741  ;;  %v869_v28 = vmul.f32 %v3097_v12, %v2952_v15  ;;  %v871_v26 = vmul.f32 %v3110_v33, %v2952_v15 }
 0x203   :  { %v867_v53 = vmul.f32 %v3085_v52, %v2952_v15 }
 0x208   :  { %v823_v47 = vpop.f32.mrf.mxu1 }
 0x209   :  { %v856_v13 = vmul.f32 0.0012755102, %v823_v47  ;;  %v3105_v23 = vpop.xlane.xlu1 %750  ;;  %v3117_v38 = vpop.xlane.xlu2 %756 }
 0x20a   :  { %v3090_v1 = vpop.xlane.xlu0 %744  ;;  %v870_v62 = vmul.f32 %v3105_v23, %v2952_v15  ;;  %v872_v48 = vmul.f32 %v3117_v38, %v2952_v15 }
 0x20b   :  { %v878_v17 = vsub.f32 %v856_v13, %v867_v53  ;;  %v868_v0 = vmul.f32 %v3090_v1, %v2952_v15 }
 0x20d   :  { %v889_v21 = vmul.f32 %v878_v17, %v2954_v3 }
 0x20f   :  { %v900_v58 = vsel %vm669_vm3, %v889_v21, 0.0 }
 0x210   :  { %v826_v50 = vpop.f32.mrf.mxu1  ;;  %901 = vadd.xlane.f32.xlu0 %v900_v58 }
 0x211   :  { %v857_v63 = vmul.f32 0.0012755102, %v826_v50  ;;  %v3123_v32 = vpop.xlane.xlu1 %759  ;;  %v3135_v58 = vpop.xlane.xlu2 %765 }
 0x212   :  { %v873_v27 = vmul.f32 %v3123_v32, %v2952_v15  ;;  %v3129_v49 = vpop.xlane.xlu0 %762 }
 0x213   :  { %v879_v29 = vsub.f32 %v857_v63, %v868_v0  ;;  %v874_v53 = vmul.f32 %v3129_v49, %v2952_v15  ;;  %v875_v63 = vmul.f32 %v3135_v58, %v2952_v15 }
 0x215   :  { %v890_v16 = vmul.f32 %v879_v29, %v2990_v61 }
 0x217   :  { %v903_v24 = vsel %vm669_vm3, %v890_v16, 0.0 }
 0x218   :  { %v829_v39 = vpop.f32.mrf.mxu1  ;;  %771 = vadd.xlane.f32.xlu0 %v770_v7  ;;  %904 = vadd.xlane.f32.xlu2 %v903_v24 }
 0x219   :  { %v858_v43 = vmul.f32 0.0012755102, %v829_v39  ;;  %v3141_v7 = vpop.xlane.xlu1 %768 }
 0x21b   :  { %v880_v35 = vsub.f32 %v858_v43, %v869_v28  ;;  %v876_v28 = vmul.f32 %v3141_v7, %v2952_v15 }
 0x21d   :  { %v891_v8 = vmul.f32 %v880_v35, %v2958_v4 }
 0x21f   :  { %v906_v55 = vsel %vm669_vm3, %v891_v8, 0.0 }
 0x220   :  { %907 = vadd.xlane.f32.xlu1 %v906_v55  ;;  %v832_v5 = vpop.f32.mrf.mxu1 }
 0x221   :  { %v859_v10 = vmul.f32 0.0012755102, %v832_v5  ;;  %v1950_v5 = vmov 0  }
 0x222   :  { %1886 = vset.pattern.permute.xlu2 %v1950_v5  ;;  %1887 = vset.pattern.permute.xlu1 %v1950_v5 }
 0x223   :  { %v881_v14 = vsub.f32 %v859_v10, %v870_v62  ;;  %1888 = vset.pattern.permute.xlu0 %v1950_v5 }
 0x225   :  { %v892_v6 = vmul.f32 %v881_v14, %v2988_v60 }
 0x227   :  { %v909_v22 = vsel %vm669_vm3, %v892_v6, 0.0 }
 0x228   :  { %v835_v34 = vpop.f32.mrf.mxu1  ;;  %910 = vadd.xlane.f32.xlu0 %v909_v22 }
 0x229   :  { %v860_v37 = vmul.f32 0.0012755102, %v835_v34 }
 0x22b   :  { %v882_v51 = vsub.f32 %v860_v37, %v871_v26 }
 0x22d   :  { %v893_v41 = vmul.f32 %v882_v51, %v2956_v20 }
 0x22f   :  { %v912_v44 = vsel %vm669_vm3, %v893_v41, 0.0 }
 0x230   :  { %v838_v46 = vpop.f32.mrf.mxu1  ;;  %913 = vadd.xlane.f32.xlu2 %v912_v44 }
 0x231   :  { %v861_v45 = vmul.f32 0.0012755102, %v838_v46 }
 0x233   :  { %v883_v2 = vsub.f32 %v861_v45, %v872_v48 }
 0x235   :  { %v894_v18 = vmul.f32 %v883_v2, %v2977_v59 }
 0x237   :  { %v915_v54 = vsel %vm669_vm3, %v894_v18, 0.0 }
 0x238   :  { %916 = vadd.xlane.f32.xlu1 %v915_v54  ;;  %v841_v9 = vpop.f32.mrf.mxu1 }
 0x239   :  { %v862_v40 = vmul.f32 0.0012755102, %v841_v9 }
 0x23b   :  { %v884_v31 = vsub.f32 %v862_v40, %v873_v27 }
 0x23d   :  { %v895_v42 = vmul.f32 %v884_v31, %v3024_v25 }
 0x23f   :  { %v918_v36 = vsel %vm669_vm3, %v895_v42, 0.0 }
 0x240   :  { %v844_v47 = vpop.f32.mrf.mxu1  ;;  %919 = vadd.xlane.f32.xlu2 %v918_v36  ;;  %v3157_v36 = vld [vmem:[%s3858_s3] sm:$0xff] }
 0x241   :  { %v863_v13 = vmul.f32 0.0012755102, %v844_v47 }
 0x243   :  { %v885_v17 = vsub.f32 %v863_v13, %v874_v53 }
 0x245   :  { %v896_v21 = vmul.f32 %v885_v17, %v3027_v30 }
 0x247   :  { %v921_v50 = vsel %vm669_vm3, %v896_v21, 0.0 }
 0x248   :  { %v847_v0 = vpop.f32.mrf.mxu1  ;;  %922 = vadd.xlane.f32.xlu0 %v921_v50 }
 0x249   :  { %v864_v29 = vmul.f32 0.0012755102, %v847_v0 }
 0x24b   :  { %v886_v56 = vsub.f32 %v864_v29, %v875_v63 }
 0x24d   :  { %v897_v16 = vmul.f32 %v886_v56, %v3022_v19 }
 0x24f   :  { %v924_v24 = vsel %vm669_vm3, %v897_v16, 0.0 }
 0x250   :  { %925 = vadd.xlane.f32.xlu1 %v924_v24  ;;  %v850_v39 = vpop.f32.mrf.mxu1  ;;  %v3166_v24 = vld [vmem:[%s3858_s3 + $0x8] sm:$0xff] }
 0x251   :  { %v865_v43 = vmul.f32 0.0012755102, %v850_v39 }
 0x253   :  { %v887_v35 = vsub.f32 %v865_v43, %v876_v28 }
 0x255   :  { %v898_v8 = vmul.f32 %v887_v35, %v3051_v11 }
 0x257   :  { %v927_v55 = vsel %vm669_vm3, %v898_v8, 0.0 }
 0x258   :  { %928 = vadd.xlane.f32.xlu0 %v927_v55  ;;  %v853_v6 = vpop.f32.mrf.mxu1 }
 0x259   :  { %v866_v26 = vmul.f32 0.0012755102, %v853_v6 }
 0x283   :  { %v902_v62 = vpop.xlane.xlu0 %901 }
 0x284   :  { %v933_v10 = vmax.f32 %v902_v62, 0.0 }
 0x286   :  { %v955_v14 = vadd.f32 1e-05, %v933_v10 }
 0x288   :  { %1894 = vrsqrt.f32 %v955_v14  ;;  %vm972_vm2 = vweird.f32 %v955_v14 }
 0x28b   :  { %v905_v22 = vpop.xlane.xlu2 %904  ;;  %v3148_v34 = vpop.xlane.xlu0 %771 }
 0x28c   :  { %v934_v37 = vmax.f32 %v905_v22, 0.0  ;;  %v877_v51 = vmul.f32 %v3148_v34, %v2952_v15  ;;  %v3172_v22 = vld [vmem:[%s3858_s3 + $0x10] sm:$0xff] }
 0x28e   :  { %v1895_v41 = vpop.eup %1894  ;;  %v956_v44 = vadd.f32 1e-05, %v934_v37  ;;  %v888_v46 = vsub.f32 %v866_v26, %v877_v51 }
 0x28f   :  { %v967_v48 = vmul.f32 %v1895_v41, %v955_v14  ;;  %vm973_vm1 = vweird.f32 %v1895_v41 }
 0x290   :  { %1896 = vrsqrt.f32 %v956_v44  ;;  %v899_v45 = vmul.f32 %v888_v46, %v2992_v57  ;;  %vm974_vm4 = vmor %vm972_vm2, %vm973_vm1  ;;  %vm982_vm6 = vweird.f32 %v956_v44 }
 0x291   :  { %v968_v2 = vmul.f32 %v1895_v41, %v967_v48 }
 0x292   :  { %v930_v18 = vsel %vm669_vm3, %v899_v45, 0.0 }
 0x293   :  { %v969_v54 = vmul.f32 0.5, %v968_v2  ;;  %v908_v9 = vpop.xlane.xlu1 %907  ;;  %931 = vadd.xlane.f32.xlu0 %v930_v18 }
 0x294   :  { %v935_v27 = vmax.f32 %v908_v9, 0.0  ;;  %v3181_v9 = vld [vmem:[%s3858_s3 + $0x18] sm:$0xff] }
 0x295   :  { %v970_v40 = vsub.f32 1.5, %v969_v54 }
 0x296   :  { %v1897_v31 = vpop.eup %1896  ;;  %v957_v42 = vadd.f32 1e-05, %v935_v27 }
 0x297   :  { %v977_v15 = vmul.f32 %v1897_v31, %v956_v44  ;;  %v971_v47 = vmul.f32 %v1895_v41, %v970_v40  ;;  %vm983_vm5 = vweird.f32 %v1897_v31 }
 0x298   :  { %1898 = vrsqrt.f32 %v957_v42  ;;  %vm984_vm7 = vmor %vm982_vm6, %vm983_vm5  ;;  %vm992_vm9 = vweird.f32 %v957_v42 }
 0x299   :  { %v978_v53 = vmul.f32 %v1897_v31, %v977_v15  ;;  %v975_v13 = vsel %vm974_vm4, %v1895_v41, %v971_v47 }
 0x29a   :  { %v3160_v17 = vmul.f32 %v975_v13, %v3157_v36 }
 0x29b   :  { %v979_v21 = vmul.f32 0.5, %v978_v53  ;;  %v911_v50 = vpop.xlane.xlu0 %910 }
 0x29c   :  { %v936_v0 = vmax.f32 %v911_v50, 0.0  ;;  %1089 = vperm.xlu2 %1886, %v3160_v17  }
 0x29d   :  { %v980_v63 = vsub.f32 1.5, %v979_v21 }
 0x29e   :  { %v1899_v29 = vpop.eup %1898  ;;  %v958_v56 = vadd.f32 1e-05, %v936_v0 }
 0x29f   :  { %v987_v16 = vmul.f32 %v1899_v29, %v957_v42  ;;  %v981_v39 = vmul.f32 %v1897_v31, %v980_v63  ;;  %vm993_vm8 = vweird.f32 %v1899_v29 }
 0x2a0   :  { %1900 = vrsqrt.f32 %v958_v56  ;;  %vm994_vm10 = vmor %vm992_vm9, %vm993_vm8  ;;  %vm1002_vm12 = vweird.f32 %v958_v56 }
 0x2a1   :  { %v988_v28 = vmul.f32 %v1899_v29, %v987_v16  ;;  %v985_v43 = vsel %vm984_vm7, %v1897_v31, %v981_v39 }
 0x2a2   :  { %v1077_v35 = vmul.f32 %v985_v43, %v3166_v24 }
 0x2a3   :  { %v989_v8 = vmul.f32 0.5, %v988_v28  ;;  %v914_v55 = vpop.xlane.xlu2 %913 }
 0x2a4   :  { %v937_v5 = vmax.f32 %v914_v55, 0.0  ;;  %1094 = vperm.xlu1 %1887, %v1077_v35   ;;  %v1154_v42 = vmul.f32 %v1077_v35, %v3090_v1  ;;  %v3192_v1 = vld [vmem:[%s3858_s3 + $0x20] sm:$0xff] }
 0x2a5   :  { %v990_v62 = vsub.f32 1.5, %v989_v8 }
 0x2a6   :  { %v1901_v10 = vpop.eup %1900  ;;  %v959_v14 = vadd.f32 1e-05, %v937_v5 }
 0x2a7   :  { %v997_v6 = vmul.f32 %v1901_v10, %v958_v56  ;;  %v991_v26 = vmul.f32 %v1899_v29, %v990_v62  ;;  %vm1003_vm11 = vweird.f32 %v1901_v10 }
 0x2a8   :  { %1902 = vrsqrt.f32 %v959_v14  ;;  %vm1004_vm13 = vmor %vm1002_vm12, %vm1003_vm11  ;;  %vm1012_vm15 = vweird.f32 %v959_v14 }
 0x2a9   :  { %v998_v37 = vmul.f32 %v1901_v10, %v997_v6  ;;  %v995_v51 = vsel %vm994_vm10, %v1899_v29, %v991_v26 }
 0x2aa   :  { %v3175_v41 = vmul.f32 %v995_v51, %v3172_v22 }
 0x2ab   :  { %v999_v44 = vmul.f32 0.5, %v998_v37  ;;  %v917_v46 = vpop.xlane.xlu1 %916 }
 0x2ac   :  { %v938_v48 = vmax.f32 %v917_v46, 0.0  ;;  %1099 = vperm.xlu0 %1888, %v3175_v41  }
 0x2ad   :  { %v1000_v45 = vsub.f32 1.5, %v999_v44 }
 0x2ae   :  { %v1903_v2 = vpop.eup %1902  ;;  %v960_v18 = vadd.f32 1e-05, %v938_v48 }
 0x2af   :  { %v1007_v54 = vmul.f32 %v1903_v2, %v959_v14  ;;  %v1001_v27 = vmul.f32 %v1901_v10, %v1000_v45  ;;  %vm1013_vm14 = vweird.f32 %v1903_v2  ;;  %v3200_v14 = vld [vmem:[%s3858_s3 + $0x28] sm:$0xff] }
 0x2b0   :  { %1904 = vrsqrt.f32 %v960_v18  ;;  %vm1014_vm1 = vmor %vm1012_vm15, %vm1013_vm14  ;;  %vm1022_vm4 = vweird.f32 %v960_v18 }
 0x2b1   :  { %v1008_v40 = vmul.f32 %v1903_v2, %v1007_v54  ;;  %v1005_v31 = vsel %vm1004_vm13, %v1901_v10, %v1001_v27  ;;  %v3209_v54 = vld [vmem:[%s3858_s3 + $0x30] sm:$0xff] }
 0x2b2   :  { %v3185_v15 = vmul.f32 %v1005_v31, %v3181_v9 }
 0x2b3   :  { %v1009_v47 = vmul.f32 0.5, %v1008_v40  ;;  %v920_v53 = vpop.xlane.xlu2 %919 }
 0x2b4   :  { %v939_v13 = vmax.f32 %v920_v53, 0.0  ;;  %1177 = vrot.lane.b32.xlu0 %v1154_v42, %s1951_s8  ;;  %1104 = vperm.xlu2 %1886, %v3185_v15  }
 0x2b5   :  { %v1010_v21 = vsub.f32 1.5, %v1009_v47 }
 0x2b6   :  { %v1905_v50 = vpop.eup %1904  ;;  %v961_v0 = vadd.f32 1e-05, %v939_v13 }
 0x2b7   :  { %v1017_v63 = vmul.f32 %v1905_v50, %v960_v18  ;;  %v1011_v29 = vmul.f32 %v1903_v2, %v1010_v21  ;;  %vm1023_vm2 = vweird.f32 %v1905_v50 }
 0x2b8   :  { %1906 = vrsqrt.f32 %v961_v0  ;;  %vm1024_vm5 = vmor %vm1022_vm4, %vm1023_vm2  ;;  %vm1032_vm7 = vweird.f32 %v961_v0 }
 0x2b9   :  { %v1018_v56 = vmul.f32 %v1905_v50, %v1017_v63  ;;  %v1015_v16 = vsel %vm1014_vm1, %v1903_v2, %v1011_v29  ;;  %v3215_v29 = vld [vmem:[%s3858_s3 + $0x38] sm:$0xff] }
 0x2ba   :  { %v1080_v39 = vmul.f32 %v1015_v16, %v3192_v1 }
 0x2bb   :  { %v1019_v28 = vmul.f32 0.5, %v1018_v56  ;;  %v923_v43 = vpop.xlane.xlu0 %922 }
 0x2bc   :  { %v940_v35 = vmax.f32 %v923_v43, 0.0  ;;  %1109 = vperm.xlu2 %1886, %v1080_v39   ;;  %v1157_v8 = vmul.f32 %v1080_v39, %v3110_v33 }
 0x2bd   :  { %v1020_v55 = vsub.f32 1.5, %v1019_v28 }
 0x2be   :  { %v1907_v5 = vpop.eup %1906  ;;  %v962_v62 = vadd.f32 1e-05, %v940_v35  ;;  %1183 = vrot.lane.b32.xlu0 %v1157_v8, %s1951_s8 }
 0x2bf   :  { %v1027_v10 = vmul.f32 %v1907_v5, %v961_v0  ;;  %v1021_v6 = vmul.f32 %v1905_v50, %v1020_v55  ;;  %vm1033_vm6 = vweird.f32 %v1907_v5 }
 0x2c0   :  { %1908 = vrsqrt.f32 %v962_v62  ;;  %vm1034_vm8 = vmor %vm1032_vm7, %vm1033_vm6  ;;  %vm1042_vm10 = vweird.f32 %v962_v62 }
 0x2c1   :  { %v1028_v26 = vmul.f32 %v1907_v5, %v1027_v10  ;;  %v1025_v37 = vsel %vm1024_vm5, %v1905_v50, %v1021_v6 }
 0x2c2   :  { %v3203_v33 = vmul.f32 %v1025_v37, %v3200_v14 }
 0x2c3   :  { %v1029_v51 = vmul.f32 0.5, %v1028_v26  ;;  %v926_v44 = vpop.xlane.xlu1 %925 }
 0x2c4   :  { %v941_v46 = vmax.f32 %v926_v44, 0.0  ;;  %1114 = vperm.xlu1 %1887, %v3203_v33   ;;  %v3232_v44 = vld [vmem:[%s3858_s3 + $0x48] sm:$0xff] }
 0x2c5   :  { %v1030_v48 = vsub.f32 1.5, %v1029_v51 }
 0x2c6   :  { %v1909_v45 = vpop.eup %1908  ;;  %v963_v2 = vadd.f32 1e-05, %v941_v46 }
 0x2c7   :  { %v1037_v18 = vmul.f32 %v1909_v45, %v962_v62  ;;  %v1031_v27 = vmul.f32 %v1907_v5, %v1030_v48  ;;  %vm1043_vm9 = vweird.f32 %v1909_v45  ;;  %v3223_v62 = vld [vmem:[%s3858_s3 + $0x40] sm:$0xff] }
 0x2c8   :  { %1910 = vrsqrt.f32 %v963_v2  ;;  %vm1044_vm11 = vmor %vm1042_vm10, %vm1043_vm9  ;;  %vm1052_vm13 = vweird.f32 %v963_v2 }
 0x2c9   :  { %v1038_v40 = vmul.f32 %v1909_v45, %v1037_v18  ;;  %v1035_v31 = vsel %vm1034_vm8, %v1907_v5, %v1031_v27  ;;  %v1156_v18 = vmul.f32 %v3185_v15, %v3105_v23  ;;  %v1938_v23 = vld [vmem:[%s3855_s0 + $0x250] sm:$0xff] }
 0x2ca   :  { %v1082_v42 = vmul.f32 %v1035_v31, %v3209_v54  ;;  %v1942_v31 = vld [vmem:[%s3855_s0 + $0x170] sm:$0xff] }
 0x2cb   :  { %v1039_v47 = vmul.f32 0.5, %v1038_v40  ;;  %v929_v53 = vpop.xlane.xlu0 %928 }
 0x2cc   :  { %v942_v13 = vmax.f32 %v929_v53, 0.0  ;;  %1119 = vperm.xlu2 %1886, %v1082_v42   ;;  %v1944_v53 = vld [vmem:[%s3855_s0 + $0x100] sm:$0xff] }
 0x2cd   :  { %v1040_v21 = vsub.f32 1.5, %v1039_v47 }
 0x2ce   :  { %v1911_v50 = vpop.eup %1910  ;;  %v964_v0 = vadd.f32 1e-05, %v942_v13 }
 0x2cf   :  { %v1047_v63 = vmul.f32 %v1911_v50, %v963_v2  ;;  %v1041_v56 = vmul.f32 %v1909_v45, %v1040_v21  ;;  %vm1053_vm12 = vweird.f32 %v1911_v50  ;;  %v1153_v2 = vmul.f32 %v3160_v17, %v3085_v52  ;;  %v1940_v17 = vld [vmem:[%s3855_s0 + $0x1e0] sm:$0xff] }
 0x2d0   :  { %1912 = vrsqrt.f32 %v964_v0  ;;  %vm1054_vm14 = vmor %vm1052_vm13, %vm1053_vm12  ;;  %vm1062_vm1 = vweird.f32 %v964_v0  ;;  %v1159_v52 = vmul.f32 %v1082_v42, %v3123_v32  ;;  %v1941_v32 = vld [vmem:[%s3855_s0 + $0x1a8] sm:$0xff]  ;;  %v1943_v42 = vld [vmem:[%s3855_s0 + $0x138] sm:$0xff] }
 0x2d1   :  { %v1048_v16 = vmul.f32 %v1911_v50, %v1047_v63  ;;  %v1045_v39 = vsel %vm1044_vm11, %v1909_v45, %v1041_v56  ;;  %v1947_v63 = vld [vmem:[%s3855_s0 + $0x58] sm:$0xff]  ;;  %v1948_v56 = vld [vmem:[%s3855_s0 + $0x20] sm:$0xff] }
 0x2d2   :  { %v1083_v28 = vmul.f32 %v1045_v39, %v3215_v29 }
 0x2d3   :  { %v1049_v43 = vmul.f32 0.5, %v1048_v16 }
 0x2d4   :  { %1124 = vperm.xlu1 %1887, %v1083_v28   ;;  %v1160_v35 = vmul.f32 %v1083_v28, %v3129_v49 }
 0x2d5   :  { %v1050_v8 = vsub.f32 1.5, %v1049_v43 }
 0x2d6   :  { %v1913_v55 = vpop.eup %1912  ;;  %1189 = vrot.lane.b32.xlu0 %v1160_v35, %s1951_s8 }
 0x2d7   :  { %v1057_v5 = vmul.f32 %v1913_v55, %v964_v0  ;;  %v1051_v10 = vmul.f32 %v1911_v50, %v1050_v8  ;;  %vm1063_vm15 = vweird.f32 %v1913_v55  ;;  %v1946_v0 = vld [vmem:[%s3855_s0 + $0x90] sm:$0xff] }
 0x2d8   :  { %vm1064_vm2 = vmor %vm1062_vm1, %vm1063_vm15 }
 0x2d9   :  { %v1058_v6 = vmul.f32 %v1913_v55, %v1057_v5  ;;  %v1055_v26 = vsel %vm1054_vm14, %v1911_v50, %v1051_v10  ;;  %v1945_v50 = vld [vmem:[%s3855_s0 + $0xc8] sm:$0xff]  ;;  %v3299_v5 = vld [vmem:[%s3858_s3 + $0x50] sm:$0xff] }
 0x2da   :  { %v3226_v37 = vmul.f32 %v1055_v26, %v3223_v62 }
 0x2db   :  { %v1059_v49 = vmul.f32 0.5, %v1058_v6 }
 0x2dc   :  { %1129 = vperm.xlu2 %1886, %v3226_v37  }
 0x2dd   :  { %v1060_v51 = vsub.f32 1.5, %v1059_v49 }
 0x2df   :  { %v1061_v46 = vmul.f32 %v1913_v55, %v1060_v51 }
 0x2e1   :  { %v1065_v48 = vsel %vm1064_vm2, %v1913_v55, %v1061_v46 }
 0x2e2   :  { %v1085_v45 = vmul.f32 %v1065_v48, %v3232_v44  ;;  %v1155_v48 = vmul.f32 %v3175_v41, %v3097_v12 }
 0x2e4   :  { %1134 = vperm.xlu1 %1887, %v1085_v45   ;;  %v1162_v15 = vmul.f32 %v1085_v45, %v3141_v7  ;;  %v1952_v7 = vmov 1  }
 0x2e5   :  { %1891 = vset.pattern.permute.xlu0 %v1952_v7 }
 0x2ec   :  { %1175 = vrot.lane.b32.xlu1 %v1153_v2, %s1951_s8 }
 0x2ed   :  { %1890 = vset.pattern.permute.xlu1 %v1952_v7 }
 0x2f4   :  { %1181 = vrot.lane.b32.xlu1 %v1156_v18, %s1951_s8 }
 0x2f6   :  { %v1090_v27 = vpop.permute.xlu2 %1089 }
 0x2f7   :  { %v3242_v40 = vmul.f32 %v1090_v27, %v2954_v3  ;;  %v1939_v3 = vld [vmem:[%s3855_s0 + $0x218] sm:$0xff] }
 0x2f9   :  { %1783 = vmatmul.msk.f32.vlgmr.msrb.gmra.mxu2 %vm669_vm3, %v3242_v40  ;;  %1794 = vmatmul.msk.f32.vlgmr.msra.gmra.mxu3 %vm669_vm3, %v3242_v40 }
 0x2fa   :  { %1805 = vmatmul.msk.f32.vlgmr.msra.gmra.mxu0 %vm669_vm3, %v3242_v40  ;;  %1512 = vmatpush.msrb.mxu2 %v1938_v23 }
 0x2fc   :  { %1187 = vrot.lane.b32.xlu1 %v1159_v52, %s1951_s8  ;;  %1513 = vmatpush.msrb.mxu2 %v1939_v3 }
 0x2fe   :  { %1514 = vmatpush.msrb.mxu2 %v1940_v17 }
 0x300   :  { %1515 = vmatpush.msrb.mxu2 %v1941_v32 }
 0x302   :  { %1516 = vmatpush.msrb.mxu2 %v1942_v31 }
 0x304   :  { %1193 = vrot.lane.b32.xlu1 %v1162_v15, %s1951_s8  ;;  %1517 = vmatpush.msrb.mxu2 %v1943_v42 }
 0x306   :  { %v932_v47 = vpop.xlane.xlu0 %931  ;;  %1518 = vmatpush.msrb.mxu2 %v1944_v53 }
 0x307   :  { %v943_v13 = vmax.f32 %v932_v47, 0.0 }
 0x308   :  { %1519 = vmatpush.msrb.mxu2 %v1945_v50 }
 0x309   :  { %v965_v21 = vadd.f32 1e-05, %v943_v13 }
 0x30a   :  { %1520 = vmatpush.msrb.mxu2 %v1946_v0 }
 0x30b   :  { %1914 = vrsqrt.f32 %v965_v21  ;;  %vm1072_vm5 = vweird.f32 %v965_v21 }
 0x30c   :  { %1521 = vmatpush.msrb.mxu2 %v1947_v63 }
 0x30e   :  { %1522 = vmatpush.msrb.mxu2 %v1948_v56  ;;  %v1105_v46 = vpop.permute.xlu2 %1104 }
 0x30f   :  { %v3316_v45 = vmul.f32 %v1105_v46, %v2988_v60  ;;  %v1158_v60 = vmul.f32 %v3203_v33, %v3117_v38  ;;  %v1161_v38 = vmul.f32 %v3226_v37, %v3135_v58 }
 0x311   :  { %v1915_v16 = vpop.eup %1914 }
 0x312   :  { %v1067_v39 = vmul.f32 %v1915_v16, %v965_v21  ;;  %vm1073_vm4 = vweird.f32 %v1915_v16 }
 0x313   :  { %vm1074_vm6 = vmor %vm1072_vm5, %vm1073_vm4 }
 0x314   :  { %v1068_v28 = vmul.f32 %v1915_v16, %v1067_v39 }
 0x316   :  { %v1069_v43 = vmul.f32 0.5, %v1068_v28  ;;  %v1095_v35 = vpop.permute.xlu1 %1094  ;;  %v1110_v12 = vpop.permute.xlu2 %1109 }
 0x317   :  { %v3288_v8 = vmul.f32 %v1095_v35, %v2990_v61  ;;  %v3329_v41 = vmul.f32 %v1110_v12, %v2956_v20 }
 0x318   :  { %v1070_v55 = vsub.f32 1.5, %v1069_v43 }
 0x319   :  { %1784 = vmatmul.msk.f32.gmra.mxu2 %vm669_vm3, %v3288_v8  ;;  %1795 = vmatmul.msk.f32.gmra.mxu3 %vm669_vm3, %v3288_v8 }
 0x31a   :  { %1806 = vmatmul.msk.f32.gmra.mxu0 %vm669_vm3, %v3288_v8  ;;  %v1071_v10 = vmul.f32 %v1915_v16, %v1070_v55 }
 0x31c   :  { %v1075_v61 = vsel %vm1074_vm6, %v1915_v16, %v1071_v10 }
 0x31d   :  { %v1086_v6 = vmul.f32 %v1075_v61, %v3299_v5 }
 0x31e   :  { %v1100_v26 = vpop.permute.xlu0 %1099 }
 0x31f   :  { %v3303_v49 = vmul.f32 %v1100_v26, %v2958_v4  ;;  %1139 = vperm.xlu2 %1886, %v1086_v6   ;;  %v1163_v51 = vmul.f32 %v1086_v6, %v3148_v34 }
 0x321   :  { %1195 = vrot.lane.b32.xlu0 %v1163_v51, %s1951_s8  ;;  %1785 = vmatmul.msk.f32.gmra.mxu2 %vm669_vm3, %v3303_v49 }
 0x322   :  { %1796 = vmatmul.msk.f32.gmra.mxu3 %vm669_vm3, %v3303_v49  ;;  %1807 = vmatmul.msk.f32.gmra.mxu0 %vm669_vm3, %v3303_v49 }
 0x326   :  { %v1178_v4 = vpop.permute.xlu0 %1177 }
 0x327   :  { %v1209_v34 = vsub.f32 %v3166_v24, %v1178_v4  ;;  %1179 = vrot.lane.b32.xlu2 %v1155_v48, %s1951_s8 }
 0x328   :  { %1889 = vset.pattern.permute.xlu2 %v1952_v7 }
 0x329   :  { %1786 = vmatmul.msk.f32.gmra.mxu2 %vm669_vm3, %v3316_v45  ;;  %1226 = vperm.xlu1 %1890, %v1209_v34  }
 0x32a   :  { %1797 = vmatmul.msk.f32.gmra.mxu3 %vm669_vm3, %v3316_v45  ;;  %1808 = vmatmul.msk.f32.gmra.mxu0 %vm669_vm3, %v3316_v45 }
 0x32f   :  { %1185 = vrot.lane.b32.xlu2 %v1158_v60, %s1951_s8 }
 0x330   :  { %v1184_v24 = vpop.permute.xlu0 %1183 }
 0x331   :  { %v1212_v2 = vsub.f32 %v3192_v1, %v1184_v24  ;;  %1787 = vmatmul.msk.f32.gmra.mxu2 %vm669_vm3, %v3329_v41  ;;  %v1120_v1 = vpop.permute.xlu2 %1119 }
 0x332   :  { %1798 = vmatmul.msk.f32.gmra.mxu3 %vm669_vm3, %v3329_v41  ;;  %1809 = vmatmul.msk.f32.gmra.mxu0 %vm669_vm3, %v3329_v41  ;;  %v3352_v18 = vmul.f32 %v1120_v1, %v3024_v25 }
 0x333   :  { %1241 = vperm.xlu1 %1890, %v1212_v2  }
 0x336   :  { %v1115_v20 = vpop.permute.xlu1 %1114 }
 0x337   :  { %v3342_v33 = vmul.f32 %v1115_v20, %v2977_v59  ;;  %1191 = vrot.lane.b32.xlu2 %v1161_v38, %s1951_s8 }
 0x339   :  { %1788 = vmatmul.msk.f32.gmra.mxu2 %vm669_vm3, %v3342_v33  ;;  %v1130_v25 = vpop.permute.xlu2 %1129 }
 0x33a   :  { %1799 = vmatmul.msk.f32.gmra.mxu3 %vm669_vm3, %v3342_v33  ;;  %1810 = vmatmul.msk.f32.gmra.mxu0 %vm669_vm3, %v3342_v33  ;;  %v3372_v37 = vmul.f32 %v1130_v25, %v3022_v19 }
 0x341   :  { %1789 = vmatmul.msk.f32.gmra.mxu2 %vm669_vm3, %v3352_v18 }
 0x342   :  { %1800 = vmatmul.msk.f32.gmra.mxu3 %vm669_vm3, %v3352_v18  ;;  %1811 = vmatmul.msk.f32.gmra.mxu0 %vm669_vm3, %v3352_v18 }
 0x346   :  { %v1125_v59 = vpop.permute.xlu1 %1124 }
 0x347   :  { %v3361_v58 = vmul.f32 %v1125_v59, %v3027_v30 }
 0x349   :  { %1790 = vmatmul.msk.f32.gmra.mxu2 %vm669_vm3, %v3361_v58  ;;  %1812 = vmatmul.msk.f32.vlgmr.msra.gmra.mxu1 %vm669_vm3, %v3361_v58 }
 0x34a   :  { %1801 = vmatmul.msk.f32.gmra.mxu3 %vm669_vm3, %v3361_v58  ;;  %1849 = vmatmul.msk.f32.vlgmr.msrb.gmra.mxu0 %vm669_vm3, %v3242_v40 }
 0x351   :  { %1791 = vmatmul.msk.f32.gmra.mxu2 %vm669_vm3, %v3372_v37  ;;  %1813 = vmatmul.msk.f32.gmra.mxu1 %vm669_vm3, %v3372_v37 }
 0x352   :  { %1802 = vmatmul.msk.f32.gmra.mxu3 %vm669_vm3, %v3372_v37  ;;  %1850 = vmatmul.msk.f32.gmra.mxu0 %vm669_vm3, %v3288_v8 }
 0x356   :  { %v1135_v30 = vpop.permute.xlu1 %1134 }
 0x357   :  { %v3383_v27 = vmul.f32 %v1135_v30, %v3051_v11 }
 0x359   :  { %1792 = vmatmul.msk.f32.gmra.mxu2 %vm669_vm3, %v3383_v27  ;;  %1814 = vmatmul.msk.f32.gmra.mxu1 %vm669_vm3, %v3383_v27 }
 0x35a   :  { %1803 = vmatmul.msk.f32.gmra.mxu3 %vm669_vm3, %v3383_v27  ;;  %1851 = vmatmul.msk.f32.gmra.mxu0 %vm669_vm3, %v3303_v49 }
 0x35e   :  { %v1176_v19 = vpop.permute.xlu1 %1175 }
 0x35f   :  { %v1208_v52 = vsub.f32 %v3157_v36, %v1176_v19 }
 0x361   :  { %1816 = vmatmul.msk.f32.vlgmr.msrb.gmra.mxu1 %vm669_vm3, %v3242_v40  ;;  %1221 = vperm.xlu2 %1889, %v1208_v52  }
 0x362   :  { %1852 = vmatmul.msk.f32.gmra.mxu0 %vm669_vm3, %v3316_v45 }
 0x366   :  { %v1182_v11 = vpop.permute.xlu1 %1181 }
 0x367   :  { %v1211_v23 = vsub.f32 %v3181_v9, %v1182_v11 }
 0x369   :  { %1817 = vmatmul.msk.f32.gmra.mxu1 %vm669_vm3, %v3288_v8  ;;  %1236 = vperm.xlu2 %1889, %v1211_v23  }
 0x36a   :  { %1853 = vmatmul.msk.f32.gmra.mxu0 %vm669_vm3, %v3329_v41 }
 0x36e   :  { %v1188_v3 = vpop.permute.xlu1 %1187 }
 0x36f   :  { %v1214_v36 = vsub.f32 %v3209_v54, %v1188_v3 }
 0x371   :  { %1818 = vmatmul.msk.f32.gmra.mxu1 %vm669_vm3, %v3303_v49  ;;  %1251 = vperm.xlu1 %1890, %v1214_v36  }
 0x372   :  { %1854 = vmatmul.msk.f32.gmra.mxu0 %vm669_vm3, %v3342_v33 }
 0x376   :  { %v1194_v17 = vpop.permute.xlu1 %1193 }
 0x377   :  { %v1217_v9 = vsub.f32 %v3232_v44, %v1194_v17  ;;  %v1424_v47 = vpop.f32.mrf.mxu0 }
 0x379   :  { %v1140_v32 = vpop.permute.xlu2 %1139  ;;  %1819 = vmatmul.msk.f32.gmra.mxu1 %vm669_vm3, %v3316_v45  ;;  %1266 = vperm.xlu1 %1890, %v1217_v9  }
 0x37a   :  { %v3412_v15 = vmul.f32 %v1140_v32, %v2992_v57  ;;  %1855 = vmatmul.msk.f32.gmra.mxu0 %vm669_vm3, %v3352_v18  ;;  %v1190_v57 = vpop.permute.xlu0 %1189 }
 0x37c   :  { %1793 = vmatmul.msk.f32.gmra.mxu2 %vm669_vm3, %v3412_v15  ;;  %1804 = vmatmul.msk.f32.gmra.mxu3 %vm669_vm3, %v3412_v15  ;;  %v1374_v7 = vpop.f32.mrf.mxu3 }
 0x381   :  { %v1180_v54 = vpop.permute.xlu2 %1179  ;;  %1820 = vmatmul.msk.f32.gmra.mxu1 %vm669_vm3, %v3329_v41 }
 0x382   :  { %v1210_v44 = vsub.f32 %v3172_v22, %v1180_v54  ;;  %1856 = vmatmul.msk.f32.gmra.mxu0 %vm669_vm3, %v3361_v58  ;;  %v1215_v22 = vsub.f32 %v3215_v29, %v1190_v57  ;;  %v1324_v29 = vpop.f32.mrf.mxu2 }
 0x384   :  { %1231 = vperm.xlu0 %1891, %v1210_v44   ;;  %1815 = vmatmul.msk.f32.vlgmr.msra.gmra.mxu2 %vm669_vm3, %v3412_v15 }
 0x385   :  { %1838 = vmatmul.msk.f32.vlgmr.msrb.gmra.mxu3 %vm669_vm3, %v3242_v40 }
 0x389   :  { %v1186_v31 = vpop.permute.xlu2 %1185  ;;  %1821 = vmatmul.msk.f32.gmra.mxu1 %vm669_vm3, %v3342_v33 }
 0x38a   :  { %v1213_v42 = vsub.f32 %v3200_v14, %v1186_v31  ;;  %1857 = vmatmul.msk.f32.gmra.mxu0 %vm669_vm3, %v3372_v37 }
 0x38c   :  { %1246 = vperm.xlu2 %1889, %v1213_v42   ;;  %1827 = vmatmul.msk.f32.vlgmr.msrb.gmra.mxu2 %vm669_vm3, %v3242_v40 }
 0x38d   :  { %1839 = vmatmul.msk.f32.gmra.mxu3 %vm669_vm3, %v3288_v8  ;;  %1256 = vperm.xlu0 %1891, %v1215_v22  }
 0x391   :  { %v1192_v53 = vpop.permute.xlu2 %1191  ;;  %1822 = vmatmul.msk.f32.gmra.mxu1 %vm669_vm3, %v3352_v18 }
 0x392   :  { %v1216_v14 = vsub.f32 %v3223_v62, %v1192_v53  ;;  %1858 = vmatmul.msk.f32.gmra.mxu0 %vm669_vm3, %v3383_v27 }
 0x393   :  { %v1196_v13 = vpop.permute.xlu0 %1195 }
 0x394   :  { %v1218_v21 = vsub.f32 %v3299_v5, %v1196_v13  ;;  %1261 = vperm.xlu2 %1889, %v1216_v14   ;;  %1828 = vmatmul.msk.f32.gmra.mxu2 %vm669_vm3, %v3288_v8 }
 0x395   :  { %1840 = vmatmul.msk.f32.gmra.mxu3 %vm669_vm3, %v3303_v49 }
 0x396   :  { %1271 = vperm.xlu0 %1891, %v1218_v21  }
 0x397   :  { %v1427_v40 = vpop.f32.mrf.mxu0 }
 0x399   :  { %1823 = vmatmul.msk.f32.gmra.mxu1 %vm669_vm3, %v3361_v58 }
 0x39a   :  { %1859 = vmatmul.msk.f32.gmra.mxu0 %vm669_vm3, %v3412_v15 }
 0x39b   :  { %v3453_v62 = vpop.permute.xlu1 %1226 }
 0x39c   :  { %v1428_v50 = vadd.f32 %v1427_v40, %v3453_v62  ;;  %v1327_v0 = vpop.f32.mrf.mxu2  ;;  %v1377_v63 = vpop.f32.mrf.mxu3  ;;  %1829 = vmatmul.msk.f32.gmra.mxu2 %vm669_vm3, %v3303_v49 }
 0x39d   :  { %v1328_v56 = vadd.f32 %v1327_v0, %v3453_v62  ;;  %v1378_v16 = vadd.f32 %v1377_v63, %v3453_v62  ;;  %1841 = vmatmul.msk.f32.gmra.mxu3 %vm669_vm3, %v3316_v45 }
 0x39e   :  { %1666 = vst [vmem:[%s3859_s4 + $0x48] sm:$0xff] %v1428_v50 }
 0x39f   :  { %1664 = vst [vmem:[%s3859_s4 + $0x38] sm:$0xff] %v1328_v56  ;;  %v3468_v39 = vpop.f32.mrf.mxu0 }
 0x3a0   :  { %1665 = vst [vmem:[%s3859_s4 + $0x40] sm:$0xff] %v1378_v16 }
 0x3a1   :  { %1824 = vmatmul.msk.f32.gmra.mxu1 %vm669_vm3, %v3372_v37 }
 0x3a4   :  { %v3475_v28 = vpop.f32.mrf.mxu2  ;;  %1830 = vmatmul.msk.f32.gmra.mxu2 %vm669_vm3, %v3316_v45 }
 0x3a5   :  { %v3479_v43 = vpop.f32.mrf.mxu3  ;;  %1842 = vmatmul.msk.f32.gmra.mxu3 %vm669_vm3, %v3329_v41  ;;  %v3489_v5 = vpop.permute.xlu1 %1241 }
 0x3a7   :  { %v1433_v35 = vpop.f32.mrf.mxu0 }
 0x3a9   :  { %1825 = vmatmul.msk.f32.gmra.mxu1 %vm669_vm3, %v3383_v27 }
 0x3ac   :  { %v1333_v8 = vpop.f32.mrf.mxu2  ;;  %1831 = vmatmul.msk.f32.gmra.mxu2 %vm669_vm3, %v3329_v41 }
 0x3ad   :  { %v1383_v55 = vpop.f32.mrf.mxu3  ;;  %1843 = vmatmul.msk.f32.gmra.mxu3 %vm669_vm3, %v3342_v33 }
 0x3af   :  { %v1436_v10 = vpop.f32.mrf.mxu0 }
 0x3b0   :  { %v1437_v61 = vadd.f32 %v1436_v10, %v3489_v5 }
 0x3b1   :  { %1826 = vmatmul.msk.f32.gmra.mxu1 %vm669_vm3, %v3412_v15 }
 0x3b2   :  { %1687 = vst [vmem:[%s3859_s4 + $0xf0] sm:$0xff] %v1437_v61 }
 0x3b4   :  { %v1336_v6 = vpop.f32.mrf.mxu2  ;;  %1832 = vmatmul.msk.f32.gmra.mxu2 %vm669_vm3, %v3342_v33 }
 0x3b5   :  { %v1337_v26 = vadd.f32 %v1336_v6, %v3489_v5  ;;  %v1386_v49 = vpop.f32.mrf.mxu3  ;;  %1844 = vmatmul.msk.f32.gmra.mxu3 %vm669_vm3, %v3352_v18 }
 0x3b6   :  { %v1387_v51 = vadd.f32 %v1386_v49, %v3489_v5 }
 0x3b7   :  { %1685 = vst [vmem:[%s3859_s4 + $0xe0] sm:$0xff] %v1337_v26  ;;  %v3506_v46 = vpop.f32.mrf.mxu0 }
 0x3b8   :  { %1686 = vst [vmem:[%s3859_s4 + $0xe8] sm:$0xff] %v1387_v51 }
 0x3bb   :  { %v3511_v48 = vpop.permute.xlu2 %1221 }
 0x3bc   :  { %v1325_v4 = vadd.f32 %v1324_v29, %v3511_v48  ;;  %v1375_v45 = vadd.f32 %v1374_v7, %v3511_v48  ;;  %v1425_v34 = vadd.f32 %v1424_v47, %v3511_v48  ;;  %1833 = vmatmul.msk.f32.gmra.mxu2 %vm669_vm3, %v3352_v18  ;;  %v1339_v60 = vpop.f32.mrf.mxu2 }
 0x3bd   :  { %1845 = vmatmul.msk.f32.gmra.mxu3 %vm669_vm3, %v3361_v58  ;;  %v1389_v41 = vpop.f32.mrf.mxu3 }
 0x3be   :  { %1657 = vst [vmem:[%s3859_s4] sm:$0xff] %v1325_v4 }
 0x3bf   :  { %1658 = vst [vmem:[%s3859_s4 + $0x8] sm:$0xff] %v1375_v45  ;;  %v1442_v12 = vpop.f32.mrf.mxu0 }
 0x3c0   :  { %1659 = vst [vmem:[%s3859_s4 + $0x10] sm:$0xff] %v1425_v34 }
 0x3c3   :  { %v3529_v24 = vpop.permute.xlu2 %1236 }
 0x3c4   :  { %v1334_v2 = vadd.f32 %v1333_v8, %v3529_v24  ;;  %v1384_v38 = vadd.f32 %v1383_v55, %v3529_v24  ;;  %v1434_v20 = vadd.f32 %v1433_v35, %v3529_v24  ;;  %1834 = vmatmul.msk.f32.gmra.mxu2 %vm669_vm3, %v3361_v58  ;;  %v1342_v59 = vpop.f32.mrf.mxu2 }
 0x3c5   :  { %1846 = vmatmul.msk.f32.gmra.mxu3 %vm669_vm3, %v3372_v37  ;;  %v1392_v58 = vpop.f32.mrf.mxu3 }
 0x3c6   :  { %1678 = vst [vmem:[%s3859_s4 + $0xa8] sm:$0xff] %v1334_v2  ;;  %v3541_v33 = vpop.f32.mrf.mxu1 }
 0x3c7   :  { %1679 = vst [vmem:[%s3859_s4 + $0xb0] sm:$0xff] %v1384_v38  ;;  %v1624_v1 = vpop.f32.mrf.mxu0 }
 0x3c8   :  { %1680 = vst [vmem:[%s3859_s4 + $0xb8] sm:$0xff] %v1434_v20  ;;  %v1625_v18 = vadd.f32 %v1624_v1, %v3511_v48 }
 0x3ca   :  { %1663 = vst.msk [vmem:[%s3859_s4 + $0x30] sm:$0xff] %vm105_vm0, %v1625_v18 }
 0x3cc   :  { %1835 = vmatmul.msk.f32.gmra.mxu2 %vm669_vm3, %v3372_v37  ;;  %v3567_v37 = vpop.f32.mrf.mxu2 }
 0x3cd   :  { %1847 = vmatmul.msk.f32.gmra.mxu3 %vm669_vm3, %v3383_v27  ;;  %v3569_v11 = vpop.f32.mrf.mxu3 }
 0x3ce   :  { %v1448_v25 = vpop.f32.mrf.mxu1 }
 0x3cf   :  { %v1627_v30 = vpop.f32.mrf.mxu0 }
 0x3d0   :  { %v1628_v19 = vadd.f32 %v1627_v30, %v3453_v62 }
 0x3d2   :  { %1670 = vst.msk [vmem:[%s3859_s4 + $0x68] sm:$0xff] %vm105_vm0, %v1628_v19 }
 0x3d4   :  { %1836 = vmatmul.msk.f32.gmra.mxu2 %vm669_vm3, %v3383_v27  ;;  %v1348_v9 = vpop.f32.mrf.mxu2 }
 0x3d5   :  { %1848 = vmatmul.msk.f32.gmra.mxu3 %vm669_vm3, %v3412_v15  ;;  %v1398_v27 = vpop.f32.mrf.mxu3 }
 0x3d6   :  { %v1451_v52 = vpop.f32.mrf.mxu1 }
 0x3d7   :  { %v1630_v23 = vpop.f32.mrf.mxu0 }
 0x3dc   :  { %1837 = vmatmul.msk.f32.gmra.mxu2 %vm669_vm3, %v3412_v15  ;;  %v1351_v7 = vpop.f32.mrf.mxu2 }
 0x3dd   :  { %v1401_v21 = vpop.f32.mrf.mxu3 }
 0x3de   :  { %v1474_v3 = vpop.f32.mrf.mxu1 }
 0x3df   :  { %v1475_v36 = vadd.f32 %v1474_v3, %v3511_v48  ;;  %v1633_v17 = vpop.f32.mrf.mxu0 }
 0x3e0   :  { %v1634_v32 = vadd.f32 %v1633_v17, %v3529_v24 }
 0x3e1   :  { %1660 = vst [vmem:[%s3859_s4 + $0x18] sm:$0xff] %v1475_v36 }
 0x3e2   :  { %1684 = vst.msk [vmem:[%s3859_s4 + $0xd8] sm:$0xff] %vm105_vm0, %v1634_v32 }
 0x3e3   :  { %v3582_v54 = vpop.permute.xlu1 %1251 }
 0x3e4   :  { %v1343_v15 = vadd.f32 %v1342_v59, %v3582_v54  ;;  %v1393_v44 = vadd.f32 %v1392_v58, %v3582_v54  ;;  %v1443_v57 = vadd.f32 %v1442_v12, %v3582_v54 }
 0x3e6   :  { %1699 = vst [vmem:[%s3859_s4 + $0x150] sm:$0xff] %v1343_v15  ;;  %v1477_v31 = vpop.f32.mrf.mxu1  ;;  %v3590_v42 = vpop.permute.xlu2 %1246 }
 0x3e7   :  { %1700 = vst [vmem:[%s3859_s4 + $0x158] sm:$0xff] %v1393_v44  ;;  %v1478_v22 = vadd.f32 %v1477_v31, %v3453_v62  ;;  %v1340_v47 = vadd.f32 %v1339_v60, %v3590_v42  ;;  %v1390_v53 = vadd.f32 %v1389_v41, %v3590_v42  ;;  %v1636_v14 = vpop.f32.mrf.mxu0  ;;  %v1440_v13 = vadd.f32 %v3506_v46, %v3590_v42 }
 0x3e8   :  { %1701 = vst [vmem:[%s3859_s4 + $0x160] sm:$0xff] %v1443_v57  ;;  %v1637_v29 = vadd.f32 %v1636_v14, %v3489_v5 }
 0x3e9   :  { %1667 = vst [vmem:[%s3859_s4 + $0x50] sm:$0xff] %v1478_v22 }
 0x3ea   :  { %1692 = vst [vmem:[%s3859_s4 + $0x118] sm:$0xff] %v1340_v47 }
 0x3eb   :  { %1693 = vst [vmem:[%s3859_s4 + $0x120] sm:$0xff] %v1390_v53  ;;  %v3613_v40 = vpop.permute.xlu1 %1266 }
 0x3ec   :  { %1694 = vst [vmem:[%s3859_s4 + $0x128] sm:$0xff] %v1440_v13  ;;  %v1352_v50 = vadd.f32 %v1351_v7, %v3613_v40  ;;  %v1402_v0 = vadd.f32 %v1401_v21, %v3613_v40  ;;  %v1452_v63 = vadd.f32 %v1451_v52, %v3613_v40 }
 0x3ed   :  { %1691 = vst.msk [vmem:[%s3859_s4 + $0x110] sm:$0xff] %vm105_vm0, %v1637_v29 }
 0x3ee   :  { %1720 = vst [vmem:[%s3859_s4 + $0x1f8] sm:$0xff] %v1352_v50  ;;  %v3628_v56 = vpop.permute.xlu2 %1261  ;;  %v1480_v16 = vpop.f32.mrf.mxu1 }
 0x3ef   :  { %1721 = vst [vmem:[%s3859_s4 + $0x200] sm:$0xff] %v1402_v0  ;;  %v1349_v35 = vadd.f32 %v1348_v9, %v3628_v56  ;;  %v1399_v8 = vadd.f32 %v1398_v27, %v3628_v56  ;;  %v1449_v55 = vadd.f32 %v1448_v25, %v3628_v56  ;;  %v1639_v10 = vpop.f32.mrf.mxu0 }
 0x3f0   :  { %1722 = vst [vmem:[%s3859_s4 + $0x208] sm:$0xff] %v1452_v63  ;;  %v1640_v61 = vadd.f32 %v1639_v10, %v3590_v42 }
 0x3f1   :  { %1713 = vst [vmem:[%s3859_s4 + $0x1c0] sm:$0xff] %v1349_v35 }
 0x3f2   :  { %1714 = vst [vmem:[%s3859_s4 + $0x1c8] sm:$0xff] %v1399_v8 }
 0x3f3   :  { %1715 = vst [vmem:[%s3859_s4 + $0x1d0] sm:$0xff] %v1449_v55 }
 0x3f4   :  { %1698 = vst.msk [vmem:[%s3859_s4 + $0x148] sm:$0xff] %vm105_vm0, %v1640_v61 }
 0x3f6   :  { %v1483_v6 = vpop.f32.mrf.mxu1  ;;  %v3653_v26 = vpop.permute.xlu0 %1231 }
 0x3f7   :  { %v1484_v49 = vadd.f32 %v1483_v6, %v3529_v24  ;;  %v1642_v51 = vpop.f32.mrf.mxu0  ;;  %v1331_v46 = vadd.f32 %v3475_v28, %v3653_v26  ;;  %v1381_v45 = vadd.f32 %v3479_v43, %v3653_v26  ;;  %v1431_v34 = vadd.f32 %v3468_v39, %v3653_v26 }
 0x3f8   :  { %v1643_v4 = vadd.f32 %v1642_v51, %v3582_v54  ;;  %v1481_v12 = vadd.f32 %v1480_v16, %v3653_v26  ;;  %v1631_v28 = vadd.f32 %v1630_v23, %v3653_v26 }
 0x3f9   :  { %1681 = vst [vmem:[%s3859_s4 + $0xc0] sm:$0xff] %v1484_v49 }
 0x3fa   :  { %1705 = vst.msk [vmem:[%s3859_s4 + $0x180] sm:$0xff] %vm105_vm0, %v1643_v4 }
 0x3fb   :  { %1671 = vst [vmem:[%s3859_s4 + $0x70] sm:$0xff] %v1331_v46 }
 0x3fc   :  { %1672 = vst [vmem:[%s3859_s4 + $0x78] sm:$0xff] %v1381_v45 }
 0x3fd   :  { %1673 = vst [vmem:[%s3859_s4 + $0x80] sm:$0xff] %v1431_v34 }
 0x3fe   :  { %1674 = vst [vmem:[%s3859_s4 + $0x88] sm:$0xff] %v1481_v12  ;;  %v1486_v39 = vpop.f32.mrf.mxu1 }
 0x3ff   :  { %1677 = vst.msk [vmem:[%s3859_s4 + $0xa0] sm:$0xff] %vm105_vm0, %v1631_v28  ;;  %v1487_v43 = vadd.f32 %v1486_v39, %v3489_v5  ;;  %v1645_v60 = vpop.f32.mrf.mxu0  ;;  %v3689_v41 = vpop.permute.xlu0 %1256 }
 0x400   :  { %v1346_v2 = vadd.f32 %v3567_v37, %v3689_v41  ;;  %v1396_v38 = vadd.f32 %v3569_v11, %v3689_v41  ;;  %v1446_v20 = vadd.f32 %v3541_v33, %v3689_v41  ;;  %v1354_v1 = vpop.f32.mrf.mxu2  ;;  %v1404_v18 = vpop.f32.mrf.mxu3  ;;  %v1646_v59 = vadd.f32 %v1645_v60, %v3689_v41 }
 0x401   :  { %1688 = vst [vmem:[%s3859_s4 + $0xf8] sm:$0xff] %v1487_v43 }
 0x402   :  { %1706 = vst [vmem:[%s3859_s4 + $0x188] sm:$0xff] %v1346_v2 }
 0x403   :  { %1707 = vst [vmem:[%s3859_s4 + $0x190] sm:$0xff] %v1396_v38 }
 0x404   :  { %1708 = vst [vmem:[%s3859_s4 + $0x198] sm:$0xff] %v1446_v20 }
 0x405   :  { %1712 = vst.msk [vmem:[%s3859_s4 + $0x1b8] sm:$0xff] %vm105_vm0, %v1646_v59 }
 0x406   :  { %v1489_v33 = vpop.f32.mrf.mxu1 }
 0x407   :  { %v1490_v58 = vadd.f32 %v1489_v33, %v3590_v42  ;;  %v1648_v25 = vpop.f32.mrf.mxu0 }
 0x408   :  { %v1649_v30 = vadd.f32 %v1648_v25, %v3628_v56  ;;  %v1454_v19 = vpop.f32.mrf.mxu2  ;;  %v1574_v37 = vpop.f32.mrf.mxu3 }
 0x409   :  { %1695 = vst [vmem:[%s3859_s4 + $0x130] sm:$0xff] %v1490_v58  ;;  %v1575_v52 = vadd.f32 %v1574_v37, %v3511_v48  ;;  %v3720_v11 = vpop.permute.xlu0 %1271 }
 0x40a   :  { %1719 = vst.msk [vmem:[%s3859_s4 + $0x1f0] sm:$0xff] %vm105_vm0, %v1649_v30  ;;  %v1355_v23 = vadd.f32 %v1354_v1, %v3720_v11  ;;  %v1405_v3 = vadd.f32 %v1404_v18, %v3720_v11  ;;  %v1455_v36 = vadd.f32 %v1454_v19, %v3720_v11 }
 0x40b   :  { %1662 = vst [vmem:[%s3859_s4 + $0x28] sm:$0xff] %v1575_v52 }
 0x40c   :  { %1727 = vst [vmem:[%s3859_s4 + $0x230] sm:$0xff] %v1355_v23 }
 0x40d   :  { %1728 = vst [vmem:[%s3859_s4 + $0x238] sm:$0xff] %v1405_v3 }
 0x40e   :  { %1729 = vst [vmem:[%s3859_s4 + $0x240] sm:$0xff] %v1455_v36  ;;  %v1492_v17 = vpop.f32.mrf.mxu1 }
 0x40f   :  { %v1493_v9 = vadd.f32 %v1492_v17, %v3582_v54  ;;  %v1651_v32 = vpop.f32.mrf.mxu0 }
 0x410   :  { %v1652_v27 = vadd.f32 %v1651_v32, %v3613_v40  ;;  %v1524_v15 = vpop.f32.mrf.mxu2  ;;  %v1577_v44 = vpop.f32.mrf.mxu3 }
 0x411   :  { %1702 = vst [vmem:[%s3859_s4 + $0x168] sm:$0xff] %v1493_v9  ;;  %v1525_v57 = vadd.f32 %v1524_v15, %v3511_v48  ;;  %v1578_v31 = vadd.f32 %v1577_v44, %v3453_v62 }
 0x412   :  { %1726 = vst.msk [vmem:[%s3859_s4 + $0x228] sm:$0xff] %vm105_vm0, %v1652_v27 }
 0x413   :  { %1661 = vst [vmem:[%s3859_s4 + $0x20] sm:$0xff] %v1525_v57 }
 0x414   :  { %1669 = vst [vmem:[%s3859_s4 + $0x60] sm:$0xff] %v1578_v31 }
 0x416   :  { %v1495_v22 = vpop.f32.mrf.mxu1 }
 0x417   :  { %v1496_v47 = vadd.f32 %v1495_v22, %v3689_v41  ;;  %v1654_v53 = vpop.f32.mrf.mxu0 }
 0x418   :  { %v1655_v48 = vadd.f32 %v1654_v53, %v3720_v11  ;;  %v1527_v14 = vpop.f32.mrf.mxu2  ;;  %v1580_v13 = vpop.f32.mrf.mxu3 }
 0x419   :  { %1709 = vst [vmem:[%s3859_s4 + $0x1a0] sm:$0xff] %v1496_v47  ;;  %v1528_v29 = vadd.f32 %v1527_v14, %v3453_v62  ;;  %v1581_v7 = vadd.f32 %v1580_v13, %v3653_v26 }
 0x41a   :  { %1733 = vst.msk [vmem:[%s3859_s4 + $0x260] sm:$0xff] %vm105_vm0, %v1655_v48 }
 0x41b   :  { %1668 = vst [vmem:[%s3859_s4 + $0x58] sm:$0xff] %v1528_v29 }
 0x41c   :  { %1676 = vst [vmem:[%s3859_s4 + $0x98] sm:$0xff] %v1581_v7 }
 0x41e   :  { %v1498_v21 = vpop.f32.mrf.mxu1 }
 0x41f   :  { %v1499_v50 = vadd.f32 %v1498_v21, %v3628_v56 }
 0x420   :  { %v1530_v0 = vpop.f32.mrf.mxu2  ;;  %v1583_v62 = vpop.f32.mrf.mxu3 }
 0x421   :  { %1716 = vst [vmem:[%s3859_s4 + $0x1d8] sm:$0xff] %v1499_v50  ;;  %v1531_v63 = vadd.f32 %v1530_v0, %v3653_v26  ;;  %v1584_v16 = vadd.f32 %v1583_v62, %v3529_v24 }
 0x423   :  { %1675 = vst [vmem:[%s3859_s4 + $0x90] sm:$0xff] %v1531_v63 }
 0x424   :  { %1683 = vst [vmem:[%s3859_s4 + $0xd0] sm:$0xff] %v1584_v16 }
 0x426   :  { %v1501_v35 = vpop.f32.mrf.mxu1 }
 0x427   :  { %v1502_v8 = vadd.f32 %v1501_v35, %v3613_v40 }
 0x428   :  { %v1533_v55 = vpop.f32.mrf.mxu2  ;;  %v1586_v10 = vpop.f32.mrf.mxu3 }
 0x429   :  { %1723 = vst [vmem:[%s3859_s4 + $0x210] sm:$0xff] %v1502_v8  ;;  %v1534_v61 = vadd.f32 %v1533_v55, %v3529_v24  ;;  %v1587_v6 = vadd.f32 %v1586_v10, %v3489_v5 }
 0x42b   :  { %1682 = vst [vmem:[%s3859_s4 + $0xc8] sm:$0xff] %v1534_v61 }
 0x42c   :  { %1690 = vst [vmem:[%s3859_s4 + $0x108] sm:$0xff] %v1587_v6 }
 0x42e   :  { %v1504_v26 = vpop.f32.mrf.mxu1 }
 0x42f   :  { %v1505_v49 = vadd.f32 %v1504_v26, %v3720_v11 }
 0x430   :  { %v1536_v51 = vpop.f32.mrf.mxu2  ;;  %v1589_v46 = vpop.f32.mrf.mxu3 }
 0x431   :  { %1730 = vst [vmem:[%s3859_s4 + $0x248] sm:$0xff] %v1505_v49  ;;  %v1537_v24 = vadd.f32 %v1536_v51, %v3489_v5  ;;  %v1590_v4 = vadd.f32 %v1589_v46, %v3590_v42 }
 0x433   :  { %1689 = vst [vmem:[%s3859_s4 + $0x100] sm:$0xff] %v1537_v24 }
 0x434   :  { %1697 = vst [vmem:[%s3859_s4 + $0x140] sm:$0xff] %v1590_v4 }
 0x438   :  { %v1539_v45 = vpop.f32.mrf.mxu2  ;;  %v1592_v34 = vpop.f32.mrf.mxu3 }
 0x439   :  { %v1540_v12 = vadd.f32 %v1539_v45, %v3590_v42  ;;  %v1593_v28 = vadd.f32 %v1592_v34, %v3582_v54 }
 0x43b   :  { %1696 = vst [vmem:[%s3859_s4 + $0x138] sm:$0xff] %v1540_v12 }
 0x43c   :  { %1704 = vst [vmem:[%s3859_s4 + $0x178] sm:$0xff] %v1593_v28 }
 0x440   :  { %v1542_v5 = vpop.f32.mrf.mxu2  ;;  %v1595_v39 = vpop.f32.mrf.mxu3 }
 0x441   :  { %v1543_v43 = vadd.f32 %v1542_v5, %v3582_v54  ;;  %v1596_v60 = vadd.f32 %v1595_v39, %v3689_v41 }
 0x443   :  { %1703 = vst [vmem:[%s3859_s4 + $0x170] sm:$0xff] %v1543_v43 }
 0x444   :  { %1711 = vst [vmem:[%s3859_s4 + $0x1b0] sm:$0xff] %v1596_v60 }
 0x448   :  { %v1545_v42 = vpop.f32.mrf.mxu2  ;;  %v1598_v2 = vpop.f32.mrf.mxu3 }
 0x449   :  { %v1546_v38 = vadd.f32 %v1545_v42, %v3689_v41  ;;  %v1599_v20 = vadd.f32 %v1598_v2, %v3628_v56 }
 0x44b   :  { %1710 = vst [vmem:[%s3859_s4 + $0x1a8] sm:$0xff] %v1546_v38 }
 0x44c   :  { %1718 = vst [vmem:[%s3859_s4 + $0x1e8] sm:$0xff] %v1599_v20 }
 0x450   :  { %v1548_v54 = vpop.f32.mrf.mxu2  ;;  %v1601_v1 = vpop.f32.mrf.mxu3 }
 0x451   :  { %v1549_v18 = vadd.f32 %v1548_v54, %v3628_v56  ;;  %v1602_v59 = vadd.f32 %v1601_v1, %v3613_v40 }
 0x453   :  { %1717 = vst [vmem:[%s3859_s4 + $0x1e0] sm:$0xff] %v1549_v18 }
 0x454   :  { %1725 = vst [vmem:[%s3859_s4 + $0x220] sm:$0xff] %v1602_v59 }
 0x458   :  { %v1551_v41 = vpop.f32.mrf.mxu2  ;;  %v1604_v33 = vpop.f32.mrf.mxu3 }
 0x459   :  { %v1552_v58 = vadd.f32 %v1551_v41, %v3613_v40  ;;  %v1605_v25 = vadd.f32 %v1604_v33, %v3720_v11 }
 0x45b   :  { %1724 = vst [vmem:[%s3859_s4 + $0x218] sm:$0xff] %v1552_v58 }
 0x45c   :  { %1732 = vst [vmem:[%s3859_s4 + $0x258] sm:$0xff] %v1605_v25 }
 0x460   :  { %v1554_v56 = vpop.f32.mrf.mxu2 }
 0x461   :  { %v1555_v30 = vadd.f32 %v1554_v56, %v3720_v11 }
 0x463   :  { %1731 = vst [vmem:[%s3859_s4 + $0x250] sm:$0xff] %v1555_v30 }

</bundles_post_ra>
